<compile_context>
chip_gen: v5e
topology: v5e:2x2
jax: 0.10.0
libtpu: 0.0.40
codegen_flags: <defaults>
</compile_context>

<pallas_src>
import jax
import jax.numpy as jnp
from jax.experimental import pallas as pl
from jax.experimental.pallas import tpu as pltpu


# ---------------------------------------------------------------------------
# Kernel
# ---------------------------------------------------------------------------
def _discriminator_kernel(x_ref, w1_ref, b1_ref, w2_ref, b2_ref,
                          w3_ref, b3_ref, o_ref, acc_ref):
    k = pl.program_id(1)

    @pl.when(k == 0)
    def _init():
        acc_ref[...] = jnp.zeros_like(acc_ref)

    # Layer 1 partial product: bf16 x bf16 on the MXU, f32 accumulation.
    acc_ref[...] += jnp.dot(x_ref[...], w1_ref[...],
                            preferred_element_type=jnp.float32)

    @pl.when(k == pl.num_programs(1) - 1)
    def _finish():
        # LeakyReLU(0.2) in f32, then store the intermediate as bf16.
        h1 = acc_ref[...] + b1_ref[...]
        h1 = jnp.maximum(h1, 0.2 * h1).astype(jnp.bfloat16)

        # Layer 2 + LeakyReLU(0.2).
        h2 = jnp.dot(h1, w2_ref[...], preferred_element_type=jnp.float32)
        h2 = h2 + b2_ref[...]
        h2 = jnp.maximum(h2, 0.2 * h2)

        # Layer 3 (out_features = 1): contract w3 (1, 256) with h2 (TB, 256)
        # over the feature axis -> logits arrive as a lane-dense (1, TB) row.
        logit = jax.lax.dot_general(
            w3_ref[...], h2,
            dimension_numbers=(((1,), (1,)), ((), ())),
            preferred_element_type=jnp.float32) + b3_ref[0, 0]

        # Sigmoid: exp on the EUP; approx reciprocal on the EUP.
        o_ref[...] = pl.reciprocal(1.0 + jnp.exp(-logit), approx=True)


# ---------------------------------------------------------------------------
# Wrapper
# ---------------------------------------------------------------------------
_LANE = 128
_TK_CAP = 2048          # K tile for layer 1 when D is large (streams W1)


def _round_up(x, m):
    return ((x + m - 1) // m) * m


def _pick_batch_tile(B, D):
    """Batch tile: multiple of 128 (lane-dense rows); taller when D is small."""
    cap = 512 if D <= 2048 else 256
    return int(max(_LANE, min(cap, _round_up(B, _LANE))))


def discriminator_forward(img, params):
    """img: (B, C, H, W) float; params: transposed-layout weights (in, out)."""
    B = img.shape[0]
    # torch: img.view(B, -1).  Stream x as bf16 (dominant DMA once weights
    # are resident); matmuls accumulate in f32.
    x = img.reshape(B, -1).astype(jnp.bfloat16)
    D = x.shape[1]

    TB = _pick_batch_tile(B, D)
    B_pad = _round_up(B, TB)

    w1, b1 = params["w1"], params["b1"]          # (D, 512) bf16, (1, 512) f32
    w2, b2 = params["w2"], params["b2"]          # (512, 256) bf16, (1, 256) f32
    w3, b3 = params["w3"], params["b3"]          # (1, 256) f32, (1, 1) f32

    if D <= _TK_CAP:
        TK, D_pad = D, D
    else:
        TK = _TK_CAP
        D_pad = _round_up(D, TK)

    if B_pad != B or D_pad != D:
        x = jnp.pad(x, ((0, B_pad - B), (0, D_pad - D)))
    if D_pad != D:
        w1 = jnp.pad(w1, ((0, D_pad - D), (0, 0)))

    n_b = B_pad // TB
    n_k = D_pad // TK
    grid = (n_b, n_k)

    resident = pl.Buffered(1)    # constant index_map -> one VMEM buffer
    if n_k == 1:
        w1_spec = pl.BlockSpec((TK, 512), lambda i, k: (k, 0),
                               pipeline_mode=resident)
    else:
        w1_spec = pl.BlockSpec((TK, 512), lambda i, k: (k, 0))

    # Padding-aware VMEM estimate ((1, N) blocks pad sublanes to 8).
    est_vmem = (
        2 * TB * TK * 2                              # x tiles (bf16, 2 buffers)
        + (1 if n_k == 1 else 2) * TK * 512 * 2      # W1 (bf16)
        + 512 * 256 * 2                              # W2 (bf16, 1 buffer)
        + 8 * (512 + 256 + 256) * 4                  # b1 / b2 / w3 (sublane pad)
        + 2 * 8 * TB * 4                             # out rows (f32)
        + TB * 512 * 4                               # f32 accumulator scratch
        + TB * (512 + 256) * 4                       # live f32 h1/h2
    )
    vmem_limit = int(min(max(est_vmem + est_vmem // 2, 16 << 20), 56 << 20))

    flops = 2 * B_pad * (D_pad * 512 + 512 * 256 + 256)
    bytes_accessed = (B_pad * D_pad * 2 + (D_pad * 512 + 512 * 256) * 2
                      + (512 + 256 + 256 + 1) * 4 + B_pad * 4)

    out_rows = pl.pallas_call(
        _discriminator_kernel,
        out_shape=jax.ShapeDtypeStruct((n_b, TB), jnp.float32),
        grid=grid,
        in_specs=[
            pl.BlockSpec((TB, TK), lambda i, k: (i, k)),            # x tile
            w1_spec,                                                # W1
            pl.BlockSpec((1, 512), lambda i, k: (0, 0),
                         pipeline_mode=resident),                   # b1
            pl.BlockSpec((512, 256), lambda i, k: (0, 0),
                         pipeline_mode=resident),                   # W2
            pl.BlockSpec((1, 256), lambda i, k: (0, 0),
                         pipeline_mode=resident),                   # b2
            pl.BlockSpec((1, 256), lambda i, k: (0, 0),
                         pipeline_mode=resident),                   # w3 row
            pl.BlockSpec(memory_space=pltpu.MemorySpace.SMEM),      # b3 scalar
        ],
        out_specs=pl.BlockSpec((1, TB), lambda i, k: (i, 0)),
        scratch_shapes=[pltpu.VMEM((TB, 512), jnp.float32)],
        compiler_params=pltpu.CompilerParams(
            dimension_semantics=("parallel", "arbitrary"),
            vmem_limit_bytes=vmem_limit,
        ),
        cost_estimate=pl.CostEstimate(
            flops=flops, transcendentals=2 * B_pad,
            bytes_accessed=bytes_accessed),
    )(x, w1, b1, w2, b2, w3, b3)

    # Lane-dense (n_b, TB) rows -> (B, 1) column; padded rows sliced off.
    return out_rows.reshape(B_pad, 1)[:B]


# ---------------------------------------------------------------------------
# Params + reference
# ---------------------------------------------------------------------------
def init_params(key, in_features):
    """nn.Linear-style init; weights stored transposed (in, out), bf16 matmuls."""
    ks = jax.random.split(key, 6)

    def lin(kw, kb, fan_in, fan_out):
        bound = float(fan_in) ** -0.5
        w = jax.random.uniform(kw, (fan_in, fan_out), jnp.float32, -bound, bound)
        b = jax.random.uniform(kb, (1, fan_out), jnp.float32, -bound, bound)
        return w, b

    w1, b1 = lin(ks[0], ks[1], in_features, 512)
    w2, b2 = lin(ks[2], ks[3], 512, 256)
    w3, b3 = lin(ks[4], ks[5], 256, 1)
    return {
        "w1": w1.astype(jnp.bfloat16), "b1": b1,
        "w2": w2.astype(jnp.bfloat16), "b2": b2,
        "w3": w3.reshape(1, 256),               # row layout for layer 3
        "b3": b3.reshape(1, 1),
    }


def reference_forward(img, params):
    """Plain-JAX reference with the same bf16-matmul / f32-accumulate math."""
    x = img.reshape(img.shape[0], -1).astype(jnp.bfloat16)
    h1 = jnp.dot(x, params["w1"], preferred_element_type=jnp.float32) + params["b1"]
    h1 = jnp.maximum(h1, 0.2 * h1).astype(jnp.bfloat16)
    h2 = jnp.dot(h1, params["w2"], preferred_element_type=jnp.float32) + params["b2"]
    h2 = jnp.maximum(h2, 0.2 * h2)
    logit = jnp.sum(h2 * params["w3"], axis=-1, keepdims=True) + params["b3"][0, 0]
    return jax.nn.sigmoid(logit)


if __name__ == "__main__":
    key = jax.random.PRNGKey(0)
    k_img, k_par = jax.random.split(key)

    # img_shape = (1, 16, 16) -> 256 input features
    B, C, H, W = 2, 1, 16, 16
    img = jax.random.normal(k_img, (B, C, H, W), jnp.float32)
    params = init_params(k_par, C * H * W)

    out = jax.block_until_ready(discriminator_forward(img, params))
    ref = reference_forward(img, params)

    assert out.shape == (B, 1)
    assert bool(jnp.all(jnp.isfinite(out)))
    assert jnp.allclose(out, ref, atol=2e-3, rtol=2e-3)

    print("KERNEL_OK")
</pallas_src>

<mosaic_0001>
module attributes {stable_mosaic.version = 11 : i64} {
  func.func @_discriminator_kernel(%arg0: i32, %arg1: i32, %arg2: memref<128x256xbf16, #tpu.memory_space<vmem>>, %arg3: memref<256x512xbf16, #tpu.memory_space<vmem>>, %arg4: memref<1x512xf32, #tpu.memory_space<vmem>>, %arg5: memref<512x256xbf16, #tpu.memory_space<vmem>>, %arg6: memref<1x256xf32, #tpu.memory_space<vmem>>, %arg7: memref<1x256xf32, #tpu.memory_space<vmem>>, %arg8: memref<1x1xf32, #tpu.memory_space<smem>>, %arg9: memref<1x128xf32, #tpu.memory_space<vmem>>, %arg10: memref<128x512xf32, #tpu.memory_space<vmem>>) attributes {dimension_semantics = [#tpu.dimension_semantics<parallel>, #tpu.dimension_semantics<arbitrary>], iteration_bounds = array<i64: 1, 1>, scalar_prefetch = 0 : i64, scratch_operands = 1 : i64, tpu.core_type = #tpu.core_type<tc>, window_params = [{transform_indices = @transform_0, window_bounds = array<i64: 128, 256>}, {pipeline_mode = #tpu.pipeline_mode<synchronous>, transform_indices = @transform_1, window_bounds = array<i64: 256, 512>}, {pipeline_mode = #tpu.pipeline_mode<synchronous>, transform_indices = @transform_2, window_bounds = array<i64: 1, 512>}, {pipeline_mode = #tpu.pipeline_mode<synchronous>, transform_indices = @transform_3, window_bounds = array<i64: 512, 256>}, {pipeline_mode = #tpu.pipeline_mode<synchronous>, transform_indices = @transform_4, window_bounds = array<i64: 1, 256>}, {pipeline_mode = #tpu.pipeline_mode<synchronous>, transform_indices = @transform_5, window_bounds = array<i64: 1, 256>}, {transform_indices = @transform_6, window_bounds = array<i64: 1, 1>}, {transform_indices = @transform_7, window_bounds = array<i64: 1, 128>}]} {
    %c0_i32 = arith.constant 0 : i32
    %0 = arith.cmpi eq, %arg1, %c0_i32 : i32
    %1 = arith.extui %0 : i1 to i32
    %c0_i32_0 = arith.constant 0 : i32
    %2 = arith.cmpi ne, %1, %c0_i32_0 : i32
    scf.if %2 {
      %cst_10 = arith.constant 0.000000e+00 : f32
      %12 = vector.broadcast %cst_10 : f32 to vector<128x512xf32>
      %c0_11 = arith.constant 0 : index
      %c0_12 = arith.constant 0 : index
      %13 = vector.load %arg10[%c0_11, %c0_12] : memref<128x512xf32, #tpu.memory_space<vmem>>, vector<128x512xf32>
      tpu.vector_store %arg10[%c0_11, %c0_12], %12 {strides = array<i32>} : memref<128x512xf32, #tpu.memory_space<vmem>>, vector<128x512xf32>,
    } else {
    }
    %c0 = arith.constant 0 : index
    %c0_1 = arith.constant 0 : index
    %3 = vector.load %arg10[%c0, %c0_1] : memref<128x512xf32, #tpu.memory_space<vmem>>, vector<128x512xf32>
    %c0_2 = arith.constant 0 : index
    %c0_3 = arith.constant 0 : index
    %4 = vector.load %arg2[%c0_2, %c0_3] : memref<128x256xbf16, #tpu.memory_space<vmem>>, vector<128x256xbf16>
    %c0_4 = arith.constant 0 : index
    %c0_5 = arith.constant 0 : index
    %5 = vector.load %arg3[%c0_4, %c0_5] : memref<256x512xbf16, #tpu.memory_space<vmem>>, vector<256x512xbf16>
    %cst = arith.constant dense<0.000000e+00> : vector<128x512xf32>
    %6 = tpu.matmul %4, %5, %cst {dimension_numbers = #tpu.dot_dimension_numbers<[1], [0], [0], [1], [0, 0, 1, 1], [], []>} : vector<128x256xbf16>, vector<256x512xbf16>, vector<128x512xf32> -> vector<128x512xf32>
    %7 = arith.addf %3, %6 : vector<128x512xf32>
    %c0_6 = arith.constant 0 : index
    %c0_7 = arith.constant 0 : index
    %8 = vector.load %arg10[%c0_6, %c0_7] : memref<128x512xf32, #tpu.memory_space<vmem>>, vector<128x512xf32>
    tpu.vector_store %arg10[%c0_6, %c0_7], %7 {strides = array<i32>} : memref<128x512xf32, #tpu.memory_space<vmem>>, vector<128x512xf32>,
    %c0_i32_8 = arith.constant 0 : i32
    %9 = arith.cmpi eq, %arg1, %c0_i32_8 : i32
    %10 = arith.extui %9 : i1 to i32
    %c0_i32_9 = arith.constant 0 : i32
    %11 = arith.cmpi ne, %10, %c0_i32_9 : i32
    scf.if %11 {
      %c0_10 = arith.constant 0 : index
      %c0_11 = arith.constant 0 : index
      %12 = vector.load %arg10[%c0_10, %c0_11] : memref<128x512xf32, #tpu.memory_space<vmem>>, vector<128x512xf32>
      %c0_12 = arith.constant 0 : index
      %c0_13 = arith.constant 0 : index
      %13 = vector.load %arg4[%c0_12, %c0_13] : memref<1x512xf32, #tpu.memory_space<vmem>>, vector<1x512xf32>
      %14 = vector.broadcast %13 : vector<1x512xf32> to vector<128x512xf32>
      %15 = arith.addf %12, %14 : vector<128x512xf32>
      %cst_14 = arith.constant 2.000000e-01 : f32
      %16 = vector.broadcast %cst_14 : f32 to vector<128x512xf32>
      %17 = arith.mulf %16, %15 : vector<128x512xf32>
      %18 = arith.maximumf %15, %17 : vector<128x512xf32>
      %19 = arith.truncf %18 : vector<128x512xf32> to vector<128x512xbf16>
      %c0_15 = arith.constant 0 : index
      %c0_16 = arith.constant 0 : index
      %20 = vector.load %arg5[%c0_15, %c0_16] : memref<512x256xbf16, #tpu.memory_space<vmem>>, vector<512x256xbf16>
      %cst_17 = arith.constant dense<0.000000e+00> : vector<128x256xf32>
      %21 = tpu.matmul %19, %20, %cst_17 {dimension_numbers = #tpu.dot_dimension_numbers<[1], [0], [0], [1], [0, 0, 1, 1], [], []>} : vector<128x512xbf16>, vector<512x256xbf16>, vector<128x256xf32> -> vector<128x256xf32>
      %c0_18 = arith.constant 0 : index
      %c0_19 = arith.constant 0 : index
      %22 = vector.load %arg6[%c0_18, %c0_19] : memref<1x256xf32, #tpu.memory_space<vmem>>, vector<1x256xf32>
      %23 = vector.broadcast %22 : vector<1x256xf32> to vector<128x256xf32>
      %24 = arith.addf %21, %23 : vector<128x256xf32>
      %cst_20 = arith.constant 2.000000e-01 : f32
      %25 = vector.broadcast %cst_20 : f32 to vector<128x256xf32>
      %26 = arith.mulf %25, %24 : vector<128x256xf32>
      %27 = arith.maximumf %24, %26 : vector<128x256xf32>
      %c0_21 = arith.constant 0 : index
      %c0_22 = arith.constant 0 : index
      %28 = vector.load %arg7[%c0_21, %c0_22] : memref<1x256xf32, #tpu.memory_space<vmem>>, vector<1x256xf32>
      %cst_23 = arith.constant dense<0.000000e+00> : vector<1x128xf32>
      %29 = tpu.matmul %28, %27, %cst_23 {dimension_numbers = #tpu.dot_dimension_numbers<[1], [1], [0], [0], [0, 0, 1, 0], [], []>} : vector<1x256xf32>, vector<128x256xf32>, vector<1x128xf32> -> vector<1x128xf32>
      %c0_24 = arith.constant 0 : index
      %c0_25 = arith.constant 0 : index
      %30 = memref.load %arg8[%c0_24, %c0_25] : memref<1x1xf32, #tpu.memory_space<smem>>
      %31 = vector.broadcast %30 : f32 to vector<1x128xf32>
      %32 = arith.addf %29, %31 : vector<1x128xf32>
      %cst_26 = arith.constant 0.000000e+00 : f32
      %33 = vector.broadcast %cst_26 : f32 to vector<1x128xf32>
      %34 = arith.subf %33, %32 : vector<1x128xf32>
      %35 = math.exp %34 : vector<1x128xf32>
      %cst_27 = arith.constant 1.000000e+00 : f32
      %36 = vector.broadcast %cst_27 : f32 to vector<1x128xf32>
      %37 = arith.addf %36, %35 : vector<1x128xf32>
      %38 = tpu.reciprocal %37 {approx = true} : vector<1x128xf32> -> vector<1x128xf32>
      %c0_28 = arith.constant 0 : index
      %c0_29 = arith.constant 0 : index
      %39 = vector.load %arg9[%c0_28, %c0_29] : memref<1x128xf32, #tpu.memory_space<vmem>>, vector<1x128xf32>
      tpu.vector_store %arg9[%c0_28, %c0_29], %38 {strides = array<i32>} : memref<1x128xf32, #tpu.memory_space<vmem>>, vector<1x128xf32>,
    } else {
    }
    return
  }
  func.func @transform_0(%arg0: i32, %arg1: i32) -> (i32, i32) {
    %c0_i32 = arith.constant 0 : i32
    return %arg0, %arg1 : i32, i32
  }
  func.func @transform_1(%arg0: i32, %arg1: i32) -> (i32, i32) {
    %c0_i32 = arith.constant 0 : i32
    %c0_i32_0 = arith.constant 0 : i32
    return %arg1, %c0_i32 : i32, i32
  }
  func.func @transform_2(%arg0: i32, %arg1: i32) -> (i32, i32) {
    %c0_i32 = arith.constant 0 : i32
    %c0_i32_0 = arith.constant 0 : i32
    %c0_i32_1 = arith.constant 0 : i32
    return %c0_i32, %c0_i32_0 : i32, i32
  }
  func.func @transform_3(%arg0: i32, %arg1: i32) -> (i32, i32) {
    %c0_i32 = arith.constant 0 : i32
    %c0_i32_0 = arith.constant 0 : i32
    %c0_i32_1 = arith.constant 0 : i32
    return %c0_i32, %c0_i32_0 : i32, i32
  }
  func.func @transform_4(%arg0: i32, %arg1: i32) -> (i32, i32) {
    %c0_i32 = arith.constant 0 : i32
    %c0_i32_0 = arith.constant 0 : i32
    %c0_i32_1 = arith.constant 0 : i32
    return %c0_i32, %c0_i32_0 : i32, i32
  }
  func.func @transform_5(%arg0: i32, %arg1: i32) -> (i32, i32) {
    %c0_i32 = arith.constant 0 : i32
    %c0_i32_0 = arith.constant 0 : i32
    %c0_i32_1 = arith.constant 0 : i32
    return %c0_i32, %c0_i32_0 : i32, i32
  }
  func.func @transform_6(%arg0: i32, %arg1: i32) -> (i32, i32) {
    %c0_i32 = arith.constant 0 : i32
    %c0_i32_0 = arith.constant 0 : i32
    %c0_i32_1 = arith.constant 0 : i32
    return %c0_i32, %c0_i32_0 : i32, i32
  }
  func.func @transform_7(%arg0: i32, %arg1: i32) -> (i32, i32) {
    %c0_i32 = arith.constant 0 : i32
    %c0_i32_0 = arith.constant 0 : i32
    return %arg0, %c0_i32 : i32, i32
  }
}

</mosaic_0001>

<bundles_post_ra>
// kernel: tpu_custom_call.1
= control target key start
LH: loop header
LB: loop body
LE: loop exit
PB: predicated region body
PF: predicated region fallthrough
CT: control target
= control target key end

     0   :  { %13 = vsyncpa [#allocation5], 0  ;;  %s3860_s0 = inlined_call_operand.hbm [shape: bf16[128,256], index: 0, kind: input, shape index: {}]   ;;  %s3861_s1 = inlined_call_operand.hbm [shape: bf16[256,512], index: 1, kind: input, shape index: {}]   ;;  %s3862_s2 = inlined_call_operand.hbm [shape: f32[1,512], index: 2, kind: input, shape index: {}]   ;;  %s3863_s3 = inlined_call_operand.hbm [shape: bf16[512,256], index: 3, kind: input, shape index: {}]   ;;  %s3864_s4 = inlined_call_operand.vmem [shape: f32[1,256], index: 4, kind: input, shape index: {}]   ;;  %s3865_s5 = inlined_call_operand.vmem [shape: f32[1,256], index: 5, kind: input, shape index: {}]   ;;  %s3866_s6 = inlined_call_operand.<no memory space> [shape: f32[1,1], index: 6, kind: input, shape index: {}]   ;;  %s3867_s7 = inlined_call_operand.hbm [shape: f32[1,128], index: 7, kind: output, shape index: {}]  }
   0x1   :  { %14 = vsyncpa [#allocation8], 0 }
   0x2   :  { %15 = vsyncpa [#allocation11], 0  ;;  %s34_s26 = sshll.u32 %s3861_s1, 4  ;;  %s35_s26 = int_to_ptr.hbm [resolvable:$true] %s34_s26 }
   0x3   :  { %16 = vsyncpa [#allocation6], 0  ;;  %s3302_s27 = smov [#allocation7]   ;;  %s21_s8 = sshll.u32 %s3860_s0, 4  ;;  %s22_s8 = int_to_ptr.hbm [resolvable:$true] %s21_s8 }
   0x4   :  { %s36_s28 = sshll.u32 %s3302_s27, 4  ;;  %s3303_s9 = smov 256   ;;  %s37_s28 = int_to_ptr.vmem [resolvable:$true] %s36_s28 }
   0x5   :  { %s3304_s10 = smov 16   ;;  %s3305_s11 = smov [#allocation4]  }
   0x6   :  { %42 = dma.hbm_to_vmem [thread:$0]  %s35_s26, 8192, %s37_s28, [#allocation8], %s3303_s9, %s3303_s9, %s3304_s10  }
   0x7   :  { %s23_s12 = sshll.u32 %s3305_s11, 4  ;;  %s3306_s13 = smov 128   ;;  %s24_s12 = int_to_ptr.vmem [resolvable:$true] %s23_s12 }
   0x8   :  { %s3307_s14 = smov 8   ;;  %s48_s16 = sshll.u32 %s3862_s2, 4  ;;  %s49_s16 = int_to_ptr.hbm [resolvable:$true] %s48_s16 }
   0x9   :  { %29 = dma.hbm_to_vmem [thread:$0]  %s22_s8, 2048, %s24_s12, [#allocation5], %s3306_s13, %s3306_s13, %s3307_s14  }
   0xa   :  { %s3308_s17 = smov [#allocation9]   ;;  %s58_s20 = sshll.u32 %s3863_s3, 4  ;;  %s59_s20 = int_to_ptr.hbm [resolvable:$true] %s58_s20 }
   0xb   :  { %s50_s18 = sshll.u32 %s3308_s17, 4  ;;  %s3309_s21 = smov [#allocation10]   ;;  %s51_s18 = int_to_ptr.vmem [resolvable:$true] %s50_s18 }
   0xc   :  { %53 = dma.hbm_to_vmem [thread:$0]  %s49_s16, 64, %s51_s18, [#allocation8]  }
   0xd   :  { %s60_s22 = sshll.u32 %s3309_s21, 4  ;;  %s61_s22 = int_to_ptr.vmem [resolvable:$true] %s60_s22 }
   0xe   :  { %66 = dma.hbm_to_vmem [thread:$0]  %s59_s20, 8192, %s61_s22, [#allocation11], %s3306_s13, %s3306_s13, %s3307_s14  }
   0xf   :  { %3294 = dma.done.wait [#allocation5], 2048  }
  0x10   :  { %3295 = vsyncadd [#allocation5], 4294965248 }
  0x11   :  { %3296 = dma.done.wait [#allocation8], 8256  }
  0x12   :  { %3297 = vsyncadd [#allocation8], 4294959040 }
  0x13   :  { %3298 = dma.done.wait [#allocation11], 8192  }
  0x14   :  { %3299 = vsyncadd [#allocation11], 4294959104  ;;  %v2619_v0 = vld [vmem:[#allocation7 + $0xe0] sm:$0xf]  ;;  %v3063_v1 = vld [vmem:[#allocation7 + $0xec] sm:$0xf0] }
  0x15   :  { %v2747_v2 = vld [vmem:[#allocation7 + $0x1e0] sm:$0xf]  ;;  %v2620_v3 = vor.u32 %v3063_v1, %v2619_v0  ;;  %v3095_v4 = vld [vmem:[#allocation7 + $0x1ec] sm:$0xf0]  ;;  %v3061_v5 = vld [vmem:[#allocation7 + $0xe4] sm:$0xf] }
  0x16   :  { %v2621_v6 = vld [vmem:[#allocation7 + $0xf0] sm:$0xf0]  ;;  %v2748_v7 = vor.u32 %v3095_v4, %v2747_v2  ;;  %v3093_v9 = vld [vmem:[#allocation7 + $0x1e4] sm:$0xf]  ;;  %v2603_v11 = vld [vmem:[#allocation7 + $0xc0] sm:$0xf] }
  0x17   :  { %v2624_v8 = vor.u32 %v3061_v5, %v2621_v6  ;;  %v2749_v10 = vld [vmem:[#allocation7 + $0x1f0] sm:$0xf0]  ;;  %701 = vmatpush.bf16.msra.mxu0 %v2620_v3  ;;  %v3059_v13 = vld [vmem:[#allocation7 + $0xcc] sm:$0xf0]  ;;  %v2731_v14 = vld [vmem:[#allocation7 + $0x1c0] sm:$0xf] }
  0x18   :  { %v2752_v12 = vor.u32 %v3093_v9, %v2749_v10  ;;  %v3091_v15 = vld [vmem:[#allocation7 + $0x1cc] sm:$0xf0]  ;;  %750 = vmatpush.bf16.msra.mxu1 %v2748_v7  ;;  %v2604_v16 = vor.u32 %v3059_v13, %v2603_v11  ;;  %v3057_v18 = vld [vmem:[#allocation7 + $0xc4] sm:$0xf]  ;;  %v2605_v19 = vld [vmem:[#allocation7 + $0xd0] sm:$0xf0] }
  0x19   :  { %799 = vmatpush.bf16.msra.mxu2 %v2624_v8  ;;  %v2732_v17 = vor.u32 %v3091_v15, %v2731_v14  ;;  %v3089_v20 = vld [vmem:[#allocation7 + $0x1c4] sm:$0xf]  ;;  %v2608_v21 = vor.u32 %v3057_v18, %v2605_v19  ;;  %v2733_v22 = vld [vmem:[#allocation7 + $0x1d0] sm:$0xf0]  ;;  %v2587_v23 = vld [vmem:[#allocation7 + $0xa0] sm:$0xf] }
  0x1a   :  { %848 = vmatpush.bf16.msra.mxu3 %v2752_v12  ;;  %v3055_v24 = vld [vmem:[#allocation7 + $0xac] sm:$0xf0]  ;;  %v2736_v25 = vor.u32 %v3089_v20, %v2733_v22  ;;  %v2715_v26 = vld [vmem:[#allocation7 + $0x1a0] sm:$0xf]  ;;  %v3053_v28 = vld [vmem:[#allocation7 + $0xa4] sm:$0xf] }
  0x1b   :  { %v3087_v27 = vld [vmem:[#allocation7 + $0x1ac] sm:$0xf0]  ;;  %702 = vmatpush.bf16.msra.mxu0 %v2604_v16  ;;  %v2588_v29 = vor.u32 %v3055_v24, %v2587_v23  ;;  %v2589_v30 = vld [vmem:[#allocation7 + $0xb0] sm:$0xf0]  ;;  %v3085_v31 = vld [vmem:[#allocation7 + $0x1a4] sm:$0xf] }
  0x1c   :  { %v2717_v32 = vld [vmem:[#allocation7 + $0x1b0] sm:$0xf0]  ;;  %751 = vmatpush.bf16.msra.mxu1 %v2732_v17  ;;  %v2716_v33 = vor.u32 %v3087_v27, %v2715_v26  ;;  %v2592_v34 = vor.u32 %v3053_v28, %v2589_v30  ;;  %v2571_v35 = vld [vmem:[#allocation7 + $0x80] sm:$0xf]  ;;  %v3051_v36 = vld [vmem:[#allocation7 + $0x8c] sm:$0xf0] }
  0x1d   :  { %800 = vmatpush.bf16.msra.mxu2 %v2608_v21  ;;  %v2699_v37 = vld [vmem:[#allocation7 + $0x180] sm:$0xf]  ;;  %v2720_v38 = vor.u32 %v3085_v31, %v2717_v32  ;;  %v3083_v39 = vld [vmem:[#allocation7 + $0x18c] sm:$0xf0]  ;;  %v3049_v40 = vld [vmem:[#allocation7 + $0x84] sm:$0xf]  ;;  %v2572_v44 = vor.u32 %v3051_v36, %v2571_v35 }
  0x1e   :  { %849 = vmatpush.bf16.msra.mxu3 %v2736_v25  ;;  %v2573_v41 = vld [vmem:[#allocation7 + $0x90] sm:$0xf0]  ;;  %v3081_v42 = vld [vmem:[#allocation7 + $0x184] sm:$0xf]  ;;  %v2700_v45 = vor.u32 %v3083_v39, %v2699_v37  ;;  %v2555_v47 = vld [vmem:[#allocation7 + $0x60] sm:$0xf] }
  0x1f   :  { %v2701_v43 = vld [vmem:[#allocation7 + $0x190] sm:$0xf0]  ;;  %703 = vmatpush.bf16.msra.mxu0 %v2588_v29  ;;  %v2576_v46 = vor.u32 %v3049_v40, %v2573_v41  ;;  %v3047_v48 = vld [vmem:[#allocation7 + $0x6c] sm:$0xf0]  ;;  %v2683_v49 = vld [vmem:[#allocation7 + $0x160] sm:$0xf] }
  0x20   :  { %752 = vmatpush.bf16.msra.mxu1 %v2716_v33  ;;  %v2704_v50 = vor.u32 %v3081_v42, %v2701_v43  ;;  %v3079_v51 = vld [vmem:[#allocation7 + $0x16c] sm:$0xf0]  ;;  %v3045_v52 = vld [vmem:[#allocation7 + $0x64] sm:$0xf]  ;;  %v2557_v53 = vld [vmem:[#allocation7 + $0x70] sm:$0xf0]  ;;  %v2556_v56 = vor.u32 %v3047_v48, %v2555_v47 }
  0x21   :  { %801 = vmatpush.bf16.msra.mxu2 %v2592_v34  ;;  %v3077_v54 = vld [vmem:[#allocation7 + $0x164] sm:$0xf]  ;;  %v2685_v55 = vld [vmem:[#allocation7 + $0x170] sm:$0xf0]  ;;  %v2684_v57 = vor.u32 %v3079_v51, %v2683_v49  ;;  %v2560_v58 = vor.u32 %v3045_v52, %v2557_v53  ;;  %v2539_v59 = vld [vmem:[#allocation7 + $0x40] sm:$0xf] }
  0x22   :  { %850 = vmatpush.bf16.msra.mxu3 %v2720_v38  ;;  %v3043_v60 = vld [vmem:[#allocation7 + $0x4c] sm:$0xf0]  ;;  %v2667_v61 = vld [vmem:[#allocation7 + $0x140] sm:$0xf]  ;;  %v2688_v62 = vor.u32 %v3077_v54, %v2685_v55  ;;  %v3041_v0 = vld [vmem:[#allocation7 + $0x44] sm:$0xf] }
  0x23   :  { %704 = vmatpush.bf16.msra.mxu0 %v2572_v44  ;;  %v3075_v63 = vld [vmem:[#allocation7 + $0x14c] sm:$0xf0]  ;;  %v2541_v1 = vld [vmem:[#allocation7 + $0x50] sm:$0xf0]  ;;  %v3073_v2 = vld [vmem:[#allocation7 + $0x144] sm:$0xf]  ;;  %v2540_v4 = vor.u32 %v3043_v60, %v2539_v59 }
  0x24   :  { %753 = vmatpush.bf16.msra.mxu1 %v2700_v45  ;;  %v2669_v3 = vld [vmem:[#allocation7 + $0x150] sm:$0xf0]  ;;  %v2668_v5 = vor.u32 %v3075_v63, %v2667_v61  ;;  %v2544_v6 = vor.u32 %v3041_v0, %v2541_v1  ;;  %v2523_v7 = vld [vmem:[#allocation7 + $0x20] sm:$0xf]  ;;  %v3039_v8 = vld [vmem:[#allocation7 + $0x2c] sm:$0xf0] }
  0x25   :  { %802 = vmatpush.bf16.msra.mxu2 %v2576_v46  ;;  %v2651_v9 = vld [vmem:[#allocation7 + $0x120] sm:$0xf]  ;;  %v2672_v10 = vor.u32 %v3073_v2, %v2669_v3  ;;  %v3071_v11 = vld [vmem:[#allocation7 + $0x12c] sm:$0xf0]  ;;  %v3037_v12 = vld [vmem:[#allocation7 + $0x24] sm:$0xf]  ;;  %v2524_v16 = vor.u32 %v3039_v8, %v2523_v7 }
  0x26   :  { %851 = vmatpush.bf16.msra.mxu3 %v2704_v50  ;;  %v2525_v13 = vld [vmem:[#allocation7 + $0x30] sm:$0xf0]  ;;  %v3069_v14 = vld [vmem:[#allocation7 + $0x124] sm:$0xf]  ;;  %v2652_v17 = vor.u32 %v3071_v11, %v2651_v9  ;;  %v2507_v19 = vld [vmem:[#allocation7] sm:$0xf] }
  0x27   :  { %705 = vmatpush.bf16.msra.mxu0 %v2556_v56  ;;  %v2653_v15 = vld [vmem:[#allocation7 + $0x130] sm:$0xf0]  ;;  %v2528_v18 = vor.u32 %v3037_v12, %v2525_v13  ;;  %v3035_v20 = vld [vmem:[#allocation7 + $0xc] sm:$0xf0]  ;;  %v2635_v21 = vld [vmem:[#allocation7 + $0x100] sm:$0xf] }
  0x28   :  { %754 = vmatpush.bf16.msra.mxu1 %v2684_v57  ;;  %v2656_v22 = vor.u32 %v3069_v14, %v2653_v15  ;;  %v3067_v23 = vld [vmem:[#allocation7 + $0x10c] sm:$0xf0]  ;;  %v3033_v24 = vld [vmem:[#allocation7 + $0x4] sm:$0xf]  ;;  %v2509_v25 = vld [vmem:[#allocation7 + $0x10] sm:$0xf0]  ;;  %v2508_v28 = vor.u32 %v3035_v20, %v2507_v19 }
  0x29   :  { %803 = vmatpush.bf16.msra.mxu2 %v2560_v58  ;;  %v3065_v26 = vld [vmem:[#allocation7 + $0x104] sm:$0xf]  ;;  %v2637_v27 = vld [vmem:[#allocation7 + $0x110] sm:$0xf0]  ;;  %v2443_v29 = vld [vmem:[#allocation4] sm:$0xf]  ;;  %v2636_v31 = vor.u32 %v3067_v23, %v2635_v21  ;;  %v2512_v32 = vor.u32 %v3033_v24, %v2509_v25 }
  0x2a   :  { %852 = vmatpush.bf16.msra.mxu3 %v2688_v62  ;;  %v3018_v30 = vld [vmem:[#allocation4 + $0x4] sm:$0xf0]  ;;  %v3017_v33 = vld [vmem:[#allocation4 + $0x4] sm:$0xf]  ;;  %v2445_v34 = vld [vmem:[#allocation4 + $0x8] sm:$0xf0]  ;;  %v2640_v35 = vor.u32 %v3065_v26, %v2637_v27 }
  0x2b   :  { %706 = vmatpush.bf16.msra.mxu0 %v2540_v4  ;;  %v3363_v36 = vor.u32 %v3018_v30, %v2443_v29  ;;  %v3365_v37 = vor.u32 %v3017_v33, %v2445_v34  ;;  %v2451_v38 = vld [vmem:[#allocation4 + $0x10] sm:$0xf]  ;;  %v3020_v39 = vld [vmem:[#allocation4 + $0x14] sm:$0xf0]  ;;  %v3019_v40 = vld [vmem:[#allocation4 + $0x14] sm:$0xf] }
  0x2c   :  { %755 = vmatpush.bf16.msra.mxu1 %v2668_v5  ;;  %v2453_v41 = vld [vmem:[#allocation4 + $0x18] sm:$0xf0]  ;;  %v3371_v42 = vor.u32 %v3020_v39, %v2451_v38  ;;  %v2459_v44 = vld [vmem:[#allocation4 + $0x20] sm:$0xf]  ;;  %v3022_v45 = vld [vmem:[#allocation4 + $0x24] sm:$0xf0] }
  0x2d   :  { %804 = vmatpush.bf16.msra.mxu2 %v2544_v6  ;;  %v3373_v43 = vor.u32 %v3019_v40, %v2453_v41  ;;  %v3021_v46 = vld [vmem:[#allocation4 + $0x24] sm:$0xf]  ;;  %v2461_v47 = vld [vmem:[#allocation4 + $0x28] sm:$0xf0]  ;;  %v3379_v48 = vor.u32 %v3022_v45, %v2459_v44  ;;  %v2629_v51 = vld [vmem:[#allocation7 + $0xf8] sm:$0xf0] }
  0x2e   :  { %853 = vmatpush.bf16.msra.mxu3 %v2672_v10  ;;  %v3381_v49 = vor.u32 %v3021_v46, %v2461_v47  ;;  %v3062_v50 = vld [vmem:[#allocation7 + $0xec] sm:$0xf]  ;;  %v2757_v54 = vld [vmem:[#allocation7 + $0x1f8] sm:$0xf0]  ;;  %v2627_v55 = vld [vmem:[#allocation7 + $0xe8] sm:$0xf] }
  0x2f   :  { %707 = vmatpush.bf16.msra.mxu0 %v2524_v16  ;;  %v3094_v52 = vld [vmem:[#allocation7 + $0x1ec] sm:$0xf]  ;;  %v2632_v53 = vor.u32 %v3062_v50, %v2629_v51  ;;  %v3064_v56 = vld [vmem:[#allocation7 + $0xf4] sm:$0xf0]  ;;  %v2755_v59 = vld [vmem:[#allocation7 + $0x1e8] sm:$0xf] }
  0x30   :  { %756 = vmatpush.bf16.msra.mxu1 %v2652_v17  ;;  %v2760_v57 = vor.u32 %v3094_v52, %v2757_v54  ;;  %v2628_v58 = vor.u32 %v3064_v56, %v2627_v55  ;;  %v3096_v60 = vld [vmem:[#allocation7 + $0x1f4] sm:$0xf0]  ;;  %v2467_v62 = vld [vmem:[#allocation4 + $0x30] sm:$0xf]  ;;  %v3023_v0 = vld [vmem:[#allocation4 + $0x34] sm:$0xf] }
  0x31   :  { %805 = vmatpush.bf16.msra.mxu2 %v2528_v18  ;;  %v2756_v61 = vor.u32 %v3096_v60, %v2755_v59  ;;  %v3024_v63 = vld [vmem:[#allocation4 + $0x34] sm:$0xf0]  ;;  %v2469_v1 = vld [vmem:[#allocation4 + $0x38] sm:$0xf0]  ;;  %v3058_v4 = vld [vmem:[#allocation7 + $0xcc] sm:$0xf] }
  0x32   :  { %854 = vmatpush.bf16.msra.mxu3 %v2656_v22  ;;  %v3387_v2 = vor.u32 %v3024_v63, %v2467_v62  ;;  %v3389_v3 = vor.u32 %v3023_v0, %v2469_v1  ;;  %v2613_v5 = vld [vmem:[#allocation7 + $0xd8] sm:$0xf0]  ;;  %v3090_v6 = vld [vmem:[#allocation7 + $0x1cc] sm:$0xf]  ;;  %v2611_v9 = vld [vmem:[#allocation7 + $0xc8] sm:$0xf] }
  0x33   :  { %708 = vmatpush.bf16.msra.mxu0 %v2508_v28  ;;  %v2616_v7 = vor.u32 %v3058_v4, %v2613_v5  ;;  %v2741_v8 = vld [vmem:[#allocation7 + $0x1d8] sm:$0xf0]  ;;  %v3060_v10 = vld [vmem:[#allocation7 + $0xd4] sm:$0xf0]  ;;  %v2739_v13 = vld [vmem:[#allocation7 + $0x1c8] sm:$0xf] }
  0x34   :  { %757 = vmatpush.bf16.msra.mxu1 %v2636_v31  ;;  %v2744_v11 = vor.u32 %v3090_v6, %v2741_v8  ;;  %v2612_v12 = vor.u32 %v3060_v10, %v2611_v9  ;;  %v3092_v14 = vld [vmem:[#allocation7 + $0x1d4] sm:$0xf0]  ;;  %v2475_v16 = vld [vmem:[#allocation4 + $0x40] sm:$0xf]  ;;  %v3026_v17 = vld [vmem:[#allocation4 + $0x44] sm:$0xf0] }
  0x35   :  { %806 = vmatpush.bf16.msra.mxu2 %v2512_v32  ;;  %v2740_v15 = vor.u32 %v3092_v14, %v2739_v13  ;;  %v3025_v18 = vld [vmem:[#allocation4 + $0x44] sm:$0xf]  ;;  %v2477_v19 = vld [vmem:[#allocation4 + $0x48] sm:$0xf0]  ;;  %v3395_v20 = vor.u32 %v3026_v17, %v2475_v16  ;;  %v2597_v23 = vld [vmem:[#allocation7 + $0xb8] sm:$0xf0] }
  0x36   :  { %855 = vmatpush.bf16.msra.mxu3 %v2640_v35  ;;  %709 = vmatmul.bf16.vlgmr.msra.gmra.mxu0 %v3363_v36  ;;  %v3397_v21 = vor.u32 %v3025_v18, %v2477_v19  ;;  %v3054_v22 = vld [vmem:[#allocation7 + $0xac] sm:$0xf]  ;;  %v2725_v26 = vld [vmem:[#allocation7 + $0x1b8] sm:$0xf0]  ;;  %v2595_v27 = vld [vmem:[#allocation7 + $0xa8] sm:$0xf] }
  0x37   :  { %758 = vmatmul.bf16.vlgmr.msra.gmra.mxu1 %v3365_v37  ;;  %897 = vmatpush.bf16.msrb.mxu0 %v2628_v58  ;;  %v3086_v24 = vld [vmem:[#allocation7 + $0x1ac] sm:$0xf]  ;;  %v2600_v25 = vor.u32 %v3054_v22, %v2597_v23  ;;  %v3056_v28 = vld [vmem:[#allocation7 + $0xb4] sm:$0xf0]  ;;  %v2723_v31 = vld [vmem:[#allocation7 + $0x1a8] sm:$0xf] }
  0x38   :  { %807 = vmatmul.bf16.vlgmr.msra.gmra.mxu2 %v3363_v36  ;;  %946 = vmatpush.bf16.msrb.mxu1 %v2756_v61  ;;  %v2728_v29 = vor.u32 %v3086_v24, %v2725_v26  ;;  %v2596_v30 = vor.u32 %v3056_v28, %v2595_v27  ;;  %v3088_v32 = vld [vmem:[#allocation7 + $0x1b4] sm:$0xf0]  ;;  %v2579_v33 = vld [vmem:[#allocation7 + $0x88] sm:$0xf]  ;;  %v3050_v41 = vld [vmem:[#allocation7 + $0x8c] sm:$0xf] }
  0x39   :  { %856 = vmatmul.bf16.vlgmr.msra.gmra.mxu3 %v3365_v37  ;;  %995 = vmatpush.bf16.msrb.mxu2 %v2632_v53  ;;  %v2724_v34 = vor.u32 %v3088_v32, %v2723_v31  ;;  %v3052_v35 = vld [vmem:[#allocation7 + $0x94] sm:$0xf0]  ;;  %v2707_v38 = vld [vmem:[#allocation7 + $0x188] sm:$0xf]  ;;  %v2581_v44 = vld [vmem:[#allocation7 + $0x98] sm:$0xf0] }
  0x3a   :  { %1044 = vmatpush.bf16.msrb.mxu3 %v2760_v57  ;;  %v3084_v39 = vld [vmem:[#allocation7 + $0x194] sm:$0xf0]  ;;  %v2580_v40 = vor.u32 %v3052_v35, %v2579_v33  ;;  %v3082_v45 = vld [vmem:[#allocation7 + $0x18c] sm:$0xf]  ;;  %v2584_v47 = vor.u32 %v3050_v41, %v2581_v44  ;;  %v2709_v50 = vld [vmem:[#allocation7 + $0x198] sm:$0xf0] }
  0x3b   :  { %898 = vmatpush.bf16.msrb.mxu0 %v2612_v12  ;;  %v2708_v46 = vor.u32 %v3084_v39, %v2707_v38  ;;  %v2712_v51 = vor.u32 %v3082_v45, %v2709_v50  ;;  %v2483_v52 = vld [vmem:[#allocation4 + $0x50] sm:$0xf]  ;;  %v3028_v53 = vld [vmem:[#allocation4 + $0x54] sm:$0xf0]  ;;  %v3027_v54 = vld [vmem:[#allocation4 + $0x54] sm:$0xf] }
  0x3c   :  { %947 = vmatpush.bf16.msrb.mxu1 %v2740_v15  ;;  %v2485_v55 = vld [vmem:[#allocation4 + $0x58] sm:$0xf0]  ;;  %v3403_v56 = vor.u32 %v3028_v53, %v2483_v52  ;;  %v2563_v58 = vld [vmem:[#allocation7 + $0x68] sm:$0xf]  ;;  %v3048_v59 = vld [vmem:[#allocation7 + $0x74] sm:$0xf0] }
  0x3d   :  { %996 = vmatpush.bf16.msrb.mxu2 %v2616_v7  ;;  %v3405_v57 = vor.u32 %v3027_v54, %v2485_v55  ;;  %v2691_v60 = vld [vmem:[#allocation7 + $0x168] sm:$0xf]  ;;  %v2564_v61 = vor.u32 %v3048_v59, %v2563_v58  ;;  %v3080_v62 = vld [vmem:[#allocation7 + $0x174] sm:$0xf0]  ;;  %v3046_v63 = vld [vmem:[#allocation7 + $0x6c] sm:$0xf] }
  0x3e   :  { %1045 = vmatpush.bf16.msrb.mxu3 %v2744_v11  ;;  %v2565_v0 = vld [vmem:[#allocation7 + $0x78] sm:$0xf0]  ;;  %v2692_v1 = vor.u32 %v3080_v62, %v2691_v60  ;;  %v3078_v5 = vld [vmem:[#allocation7 + $0x16c] sm:$0xf]  ;;  %v2547_v7 = vld [vmem:[#allocation7 + $0x48] sm:$0xf] }
  0x3f   :  { %899 = vmatpush.bf16.msrb.mxu0 %v2596_v30  ;;  %v2568_v4 = vor.u32 %v3046_v63, %v2565_v0  ;;  %v2693_v6 = vld [vmem:[#allocation7 + $0x178] sm:$0xf0]  ;;  %v3044_v9 = vld [vmem:[#allocation7 + $0x54] sm:$0xf0]  ;;  %v2675_v10 = vld [vmem:[#allocation7 + $0x148] sm:$0xf] }
  0x40   :  { %948 = vmatpush.bf16.msrb.mxu1 %v2724_v34  ;;  %v2696_v8 = vor.u32 %v3078_v5, %v2693_v6  ;;  %v3076_v11 = vld [vmem:[#allocation7 + $0x154] sm:$0xf0]  ;;  %v2548_v12 = vor.u32 %v3044_v9, %v2547_v7  ;;  %v3042_v14 = vld [vmem:[#allocation7 + $0x4c] sm:$0xf]  ;;  %v2549_v15 = vld [vmem:[#allocation7 + $0x58] sm:$0xf0] }
  0x41   :  { %997 = vmatpush.bf16.msrb.mxu2 %v2600_v25  ;;  %v2676_v13 = vor.u32 %v3076_v11, %v2675_v10  ;;  %v3074_v16 = vld [vmem:[#allocation7 + $0x14c] sm:$0xf]  ;;  %v2552_v17 = vor.u32 %v3042_v14, %v2549_v15  ;;  %v2677_v18 = vld [vmem:[#allocation7 + $0x158] sm:$0xf0]  ;;  %v2531_v19 = vld [vmem:[#allocation7 + $0x28] sm:$0xf] }
  0x42   :  { %1046 = vmatpush.bf16.msrb.mxu3 %v2728_v29  ;;  %v3040_v22 = vld [vmem:[#allocation7 + $0x34] sm:$0xf0]  ;;  %v2680_v23 = vor.u32 %v3074_v16, %v2677_v18  ;;  %v2659_v24 = vld [vmem:[#allocation7 + $0x128] sm:$0xf]  ;;  %v3038_v26 = vld [vmem:[#allocation7 + $0x2c] sm:$0xf] }
  0x43   :  { %900 = vmatpush.bf16.msrb.mxu0 %v2580_v40  ;;  %v3072_v25 = vld [vmem:[#allocation7 + $0x134] sm:$0xf0]  ;;  %v2532_v27 = vor.u32 %v3040_v22, %v2531_v19  ;;  %v2533_v28 = vld [vmem:[#allocation7 + $0x38] sm:$0xf0]  ;;  %v3070_v29 = vld [vmem:[#allocation7 + $0x12c] sm:$0xf] }
  0x44   :  { %949 = vmatpush.bf16.msrb.mxu1 %v2708_v46  ;;  %v2661_v30 = vld [vmem:[#allocation7 + $0x138] sm:$0xf0]  ;;  %v2660_v31 = vor.u32 %v3072_v25, %v2659_v24  ;;  %v2536_v32 = vor.u32 %v3038_v26, %v2533_v28  ;;  %v2491_v33 = vld [vmem:[#allocation4 + $0x60] sm:$0xf]  ;;  %v3030_v34 = vld [vmem:[#allocation4 + $0x64] sm:$0xf0] }
  0x45   :  { %998 = vmatpush.bf16.msrb.mxu2 %v2584_v47  ;;  %v2664_v35 = vor.u32 %v3070_v29, %v2661_v30  ;;  %v3029_v38 = vld [vmem:[#allocation4 + $0x64] sm:$0xf]  ;;  %v2493_v39 = vld [vmem:[#allocation4 + $0x68] sm:$0xf0]  ;;  %v3411_v40 = vor.u32 %v3030_v34, %v2491_v33  ;;  %v2515_v41 = vld [vmem:[#allocation7 + $0x8] sm:$0xf] }
  0x46   :  { %714 = vmatmul.bf16.gmra.mxu0 %v3371_v42  ;;  %1047 = vmatpush.bf16.msrb.mxu3 %v2712_v51  ;;  %v3036_v44 = vld [vmem:[#allocation7 + $0x14] sm:$0xf0]  ;;  %v2643_v45 = vld [vmem:[#allocation7 + $0x108] sm:$0xf]  ;;  %v3413_v46 = vor.u32 %v3029_v38, %v2493_v39  ;;  %v3034_v51 = vld [vmem:[#allocation7 + $0xc] sm:$0xf] }
  0x47   :  { %763 = vmatmul.bf16.gmra.mxu1 %v3373_v43  ;;  %901 = vmatpush.bf16.msrb.mxu0 %v2564_v61  ;;  %v2516_v47 = vor.u32 %v3036_v44, %v2515_v41  ;;  %v3068_v50 = vld [vmem:[#allocation7 + $0x114] sm:$0xf0]  ;;  %v2517_v52 = vld [vmem:[#allocation7 + $0x18] sm:$0xf0]  ;;  %v3066_v55 = vld [vmem:[#allocation7 + $0x10c] sm:$0xf] }
  0x48   :  { %812 = vmatmul.bf16.gmra.mxu2 %v3371_v42  ;;  %950 = vmatpush.bf16.msrb.mxu1 %v2692_v1  ;;  %v2644_v53 = vor.u32 %v3068_v50, %v2643_v45  ;;  %v2520_v54 = vor.u32 %v3034_v51, %v2517_v52  ;;  %v2645_v58 = vld [vmem:[#allocation7 + $0x118] sm:$0xf0]  ;;  %v2499_v60 = vld [vmem:[#allocation4 + $0x70] sm:$0xf]  ;;  %v3032_v61 = vld [vmem:[#allocation4 + $0x74] sm:$0xf0] }
  0x49   :  { %861 = vmatmul.bf16.gmra.mxu3 %v3373_v43  ;;  %999 = vmatpush.bf16.msrb.mxu2 %v2568_v4  ;;  %v2648_v59 = vor.u32 %v3066_v55, %v2645_v58  ;;  %v3031_v62 = vld [vmem:[#allocation4 + $0x74] sm:$0xf]  ;;  %v2501_v63 = vld [vmem:[#allocation4 + $0x78] sm:$0xf0]  ;;  %v3419_v0 = vor.u32 %v3032_v61, %v2499_v60  ;;  %v3427_v6 = vld [vmem:[#allocation9] sm:$0xf] }
  0x4a   :  { %1048 = vmatpush.bf16.msrb.mxu3 %v2696_v8  ;;  %v3421_v1 = vor.u32 %v3031_v62, %v2501_v63  ;;  %v3431_v8 = vperm.slane %v3427_v6, 0  ;;  %v3438_v16 = vperm.slane %v3427_v6, 1  ;;  %s3310_s25 = smov [#allocation12]   ;;  %s2429_s29 = sshll.u32 %s3867_s7, 4  ;;  %s2430_s29 = int_to_ptr.hbm [resolvable:$true] %s2429_s29 }
  0x4b   :  { %902 = vmatpush.bf16.msrb.mxu0 %v2548_v12  ;;  %s2427_s26 = sshll.u32 %s3310_s25, 4  ;;  %s2428_s26 = int_to_ptr.vmem [resolvable:$true] %s2427_s26 }
  0x4c   :  { %951 = vmatpush.bf16.msrb.mxu1 %v2676_v13 }
  0x4d   :  { %1000 = vmatpush.bf16.msrb.mxu2 %v2552_v17 }
  0x4e   :  { %1049 = vmatpush.bf16.msrb.mxu3 %v2680_v23 }
  0x4f   :  { %903 = vmatpush.bf16.msrb.mxu0 %v2532_v27 }
  0x50   :  { %952 = vmatpush.bf16.msrb.mxu1 %v2660_v31 }
  0x51   :  { %1001 = vmatpush.bf16.msrb.mxu2 %v2536_v32 }
  0x52   :  { %1050 = vmatpush.bf16.msrb.mxu3 %v2664_v35 }
  0x53   :  { %904 = vmatpush.bf16.msrb.mxu0 %v2516_v47 }
  0x54   :  { %953 = vmatpush.bf16.msrb.mxu1 %v2644_v53 }
  0x55   :  { %1002 = vmatpush.bf16.msrb.mxu2 %v2520_v54 }
  0x56   :  { %719 = vmatmul.bf16.gmra.mxu0 %v3379_v48  ;;  %1051 = vmatpush.bf16.msrb.mxu3 %v2648_v59 }
  0x57   :  { %768 = vmatmul.bf16.gmra.mxu1 %v3381_v49 }
  0x58   :  { %817 = vmatmul.bf16.gmra.mxu2 %v3379_v48 }
  0x59   :  { %866 = vmatmul.bf16.gmra.mxu3 %v3381_v49 }
  0x66   :  { %724 = vmatmul.bf16.gmra.mxu0 %v3387_v2 }
  0x67   :  { %773 = vmatmul.bf16.gmra.mxu1 %v3389_v3 }
  0x68   :  { %822 = vmatmul.bf16.gmra.mxu2 %v3387_v2 }
  0x69   :  { %871 = vmatmul.bf16.gmra.mxu3 %v3389_v3 }
  0x76   :  { %729 = vmatmul.bf16.gmra.mxu0 %v3395_v20 }
  0x77   :  { %778 = vmatmul.bf16.gmra.mxu1 %v3397_v21 }
  0x78   :  { %827 = vmatmul.bf16.gmra.mxu2 %v3395_v20 }
  0x79   :  { %876 = vmatmul.bf16.gmra.mxu3 %v3397_v21 }
  0x86   :  { %734 = vmatmul.bf16.gmra.mxu0 %v3403_v56 }
  0x87   :  { %783 = vmatmul.bf16.gmra.mxu1 %v3405_v57 }
  0x88   :  { %832 = vmatmul.bf16.gmra.mxu2 %v3403_v56 }
  0x89   :  { %881 = vmatmul.bf16.gmra.mxu3 %v3405_v57 }
  0x96   :  { %739 = vmatmul.bf16.gmra.mxu0 %v3411_v40 }
  0x97   :  { %788 = vmatmul.bf16.gmra.mxu1 %v3413_v46 }
  0x98   :  { %837 = vmatmul.bf16.gmra.mxu2 %v3411_v40 }
  0x99   :  { %886 = vmatmul.bf16.gmra.mxu3 %v3413_v46 }
  0xa6   :  { %744 = vmatmul.bf16.gmra.mxu0 %v3419_v0 }
  0xa7   :  { %793 = vmatmul.bf16.gmra.mxu1 %v3421_v1 }
  0xa8   :  { %842 = vmatmul.bf16.gmra.mxu2 %v3419_v0 }
  0xa9   :  { %891 = vmatmul.bf16.gmra.mxu3 %v3421_v1 }
  0xb3   :  { %v710_v4 = vpop.f32.mrf.mxu0 }
  0xb4   :  { %v759_v5 = vpop.f32.mrf.mxu1 }
  0xb5   :  { %v760_v7 = vadd.f32 %v759_v5, %v710_v4 }
  0xb6   :  { %905 = vmatmul.bf16.vlgmr.msrb.gmra.mxu0 %v3363_v36 }
  0xb7   :  { %954 = vmatmul.bf16.vlgmr.msrb.gmra.mxu1 %v3365_v37  ;;  %v1298_v10 = vadd.f32 %v3431_v8, %v760_v7 }
  0xb8   :  { %1003 = vmatmul.bf16.vlgmr.msrb.gmra.mxu2 %v3363_v36 }
  0xb9   :  { %1052 = vmatmul.bf16.vlgmr.msrb.gmra.mxu3 %v3365_v37  ;;  %v1362_v17 = vmul.f32 0.2, %v1298_v10 }
  0xbb   :  { %v808_v9 = vpop.f32.mrf.mxu2  ;;  %v712_v12 = vpop.f32.mrf.mxu0  ;;  %v1426_v23 = vmax.f32 %v1298_v10, %v1362_v17 }
  0xbc   :  { %v857_v11 = vpop.f32.mrf.mxu3  ;;  %v761_v14 = vpop.f32.mrf.mxu1 }
  0xbd   :  { %v858_v13 = vadd.f32 %v857_v11, %v808_v9  ;;  %v762_v15 = vadd.f32 %v761_v14, %v712_v12 }
  0xbf   :  { %v1302_v18 = vadd.f32 %v3431_v8, %v762_v15  ;;  %v1299_v22 = vadd.f32 %v3438_v16, %v858_v13 }
  0xc1   :  { %v1366_v19 = vmul.f32 0.2, %v1302_v18  ;;  %v1363_v30 = vmul.f32 0.2, %v1299_v22 }
  0xc3   :  { %v810_v36 = vpop.f32.mrf.mxu2  ;;  %v1430_v37 = vmax.f32 %v1302_v18, %v1366_v19  ;;  %v715_v25 = vpop.f32.mrf.mxu0  ;;  %v1427_v33 = vmax.f32 %v1299_v22, %v1363_v30 }
  0xc4   :  { %v859_v24 = vpop.f32.mrf.mxu3  ;;  %v764_v27 = vpop.f32.mrf.mxu1 }
  0xc5   :  { %v860_v26 = vadd.f32 %v859_v24, %v810_v36  ;;  %v3442_v28 = vpack.c.bf16 %v1430_v37, %v1426_v23  ;;  %v765_v29 = vadd.f32 %v764_v27, %v715_v25 }
  0xc6   :  { %910 = vmatmul.bf16.gmra.mxu0 %v3371_v42 }
  0xc7   :  { %v1303_v31 = vadd.f32 %v3438_v16, %v860_v26  ;;  %959 = vmatmul.bf16.gmra.mxu1 %v3373_v43  ;;  %v1306_v38 = vadd.f32 %v3431_v8, %v765_v29 }
  0xc8   :  { %1008 = vmatmul.bf16.gmra.mxu2 %v3371_v42 }
  0xc9   :  { %v1367_v32 = vmul.f32 0.2, %v1303_v31  ;;  %1057 = vmatmul.bf16.gmra.mxu3 %v3373_v43  ;;  %v1370_v51 = vmul.f32 0.2, %v1306_v38 }
  0xcb   :  { %v1431_v34 = vmax.f32 %v1303_v31, %v1367_v32  ;;  %v813_v35 = vpop.f32.mrf.mxu2  ;;  %v717_v41 = vpop.f32.mrf.mxu0  ;;  %v1434_v43 = vmax.f32 %v1306_v38, %v1370_v51 }
  0xcc   :  { %v862_v39 = vpop.f32.mrf.mxu3  ;;  %v766_v47 = vpop.f32.mrf.mxu1 }
  0xcd   :  { %v3450_v44 = vpack.c.bf16 %v1431_v34, %v1427_v33  ;;  %v863_v45 = vadd.f32 %v862_v39, %v813_v35  ;;  %v767_v50 = vadd.f32 %v766_v47, %v717_v41 }
  0xcf   :  { %v1310_v52 = vadd.f32 %v3431_v8, %v767_v50  ;;  %v1307_v42 = vadd.f32 %v3438_v16, %v863_v45 }
  0xd1   :  { %v1374_v53 = vmul.f32 0.2, %v1310_v52  ;;  %v1371_v4 = vmul.f32 0.2, %v1307_v42 }
  0xd3   :  { %v815_v54 = vpop.f32.mrf.mxu2  ;;  %v1438_v55 = vmax.f32 %v1310_v52, %v1374_v53  ;;  %v720_v59 = vpop.f32.mrf.mxu0  ;;  %v1435_v9 = vmax.f32 %v1307_v42, %v1371_v4  ;;  %v2819_v4 = vld [vmem:[#allocation10 + $0x70] sm:$0xf] }
  0xd4   :  { %v864_v58 = vpop.f32.mrf.mxu3  ;;  %v769_v61 = vpop.f32.mrf.mxu1 }
  0xd5   :  { %v865_v60 = vadd.f32 %v864_v58, %v815_v54  ;;  %v770_v62 = vadd.f32 %v769_v61, %v720_v59  ;;  %v3454_v63 = vpack.c.bf16 %v1438_v55, %v1434_v43  ;;  %v2947_v61 = vld [vmem:[#allocation10 + $0x170] sm:$0xf] }
  0xd6   :  { %915 = vmatmul.bf16.gmra.mxu0 %v3379_v48 }
  0xd7   :  { %v1311_v5 = vadd.f32 %v3438_v16, %v865_v60  ;;  %964 = vmatmul.bf16.gmra.mxu1 %v3381_v49  ;;  %v1314_v12 = vadd.f32 %v3431_v8, %v770_v62  ;;  %v3144_v62 = vld [vmem:[#allocation10 + $0x174] sm:$0xf0] }
  0xd8   :  { %1013 = vmatmul.bf16.gmra.mxu2 %v3379_v48 }
  0xd9   :  { %v1375_v7 = vmul.f32 0.2, %v1311_v5  ;;  %1062 = vmatmul.bf16.gmra.mxu3 %v3381_v49  ;;  %v1378_v22 = vmul.f32 0.2, %v1314_v12 }
  0xdb   :  { %v1439_v10 = vmax.f32 %v1311_v5, %v1375_v7  ;;  %v818_v11 = vpop.f32.mrf.mxu2  ;;  %v722_v14 = vpop.f32.mrf.mxu0  ;;  %v1442_v49 = vmax.f32 %v1314_v12, %v1378_v22  ;;  %v3160_v12 = vld [vmem:[#allocation10 + $0x1f4] sm:$0xf0] }
  0xdc   :  { %v867_v13 = vpop.f32.mrf.mxu3  ;;  %v771_v17 = vpop.f32.mrf.mxu1 }
  0xdd   :  { %v868_v15 = vadd.f32 %v867_v13, %v818_v11  ;;  %v3462_v18 = vpack.c.bf16 %v1439_v10, %v1435_v9  ;;  %v772_v19 = vadd.f32 %v771_v17, %v722_v14  ;;  %v2948_v9 = vor.u32 %v3144_v62, %v2947_v61  ;;  %v3112_v10 = vld [vmem:[#allocation10 + $0x74] sm:$0xf0]  ;;  %v3011_v11 = vld [vmem:[#allocation10 + $0x1f0] sm:$0xf] }
  0xde   :  { %v2820_v14 = vor.u32 %v3112_v10, %v2819_v4  ;;  %v2883_v17 = vld [vmem:[#allocation10 + $0xf0] sm:$0xf] }
  0xdf   :  { %v1318_v36 = vadd.f32 %v3431_v8, %v772_v19  ;;  %v1315_v48 = vadd.f32 %v3438_v16, %v868_v15  ;;  %v3012_v15 = vor.u32 %v3160_v12, %v3011_v11  ;;  %v3128_v19 = vld [vmem:[#allocation10 + $0xf4] sm:$0xf0]  ;;  %2010 = vmatpush.bf16.msra.mxu2 %v2948_v9  ;;  %v3003_v9 = vld [vmem:[#allocation10 + $0x1e0] sm:$0xf] }
  0xe0   :  { %1912 = vmatpush.bf16.msra.mxu0 %v2820_v14  ;;  %v3122_v14 = vld [vmem:[#allocation10 + $0xc4] sm:$0xf0] }
  0xe1   :  { %v1382_v23 = vmul.f32 0.2, %v1318_v36  ;;  %v1379_v32 = vmul.f32 0.2, %v1315_v48  ;;  %2059 = vmatpush.bf16.msra.mxu3 %v3012_v15 }
  0xe3   :  { %v820_v37 = vpop.f32.mrf.mxu2  ;;  %v1446_v24 = vmax.f32 %v1318_v36, %v1382_v23  ;;  %v725_v26 = vpop.f32.mrf.mxu0  ;;  %v1443_v35 = vmax.f32 %v1315_v48, %v1379_v32  ;;  %v2884_v48 = vor.u32 %v3128_v19, %v2883_v17 }
  0xe4   :  { %v869_v25 = vpop.f32.mrf.mxu3  ;;  %v774_v29 = vpop.f32.mrf.mxu1 }
  0xe5   :  { %v870_v27 = vadd.f32 %v869_v25, %v820_v37  ;;  %v775_v30 = vadd.f32 %v774_v29, %v725_v26  ;;  %v3466_v31 = vpack.c.bf16 %v1446_v24, %v1442_v49  ;;  %1961 = vmatpush.bf16.msra.mxu1 %v2884_v48  ;;  %v2811_v26 = vld [vmem:[#allocation10 + $0x60] sm:$0xf]  ;;  %v3104_v48 = vld [vmem:[#allocation10 + $0x34] sm:$0xf0] }
  0xe6   :  { %920 = vmatmul.bf16.gmra.mxu0 %v3387_v2  ;;  %v2875_v29 = vld [vmem:[#allocation10 + $0xe0] sm:$0xf] }
  0xe7   :  { %v1319_v33 = vadd.f32 %v3438_v16, %v870_v27  ;;  %969 = vmatmul.bf16.gmra.mxu1 %v3389_v3  ;;  %v1322_v41 = vadd.f32 %v3431_v8, %v775_v30  ;;  %v3110_v27 = vld [vmem:[#allocation10 + $0x64] sm:$0xf0] }
  0xe8   :  { %1018 = vmatmul.bf16.gmra.mxu2 %v3387_v2 }
  0xe9   :  { %v1383_v34 = vmul.f32 0.2, %v1319_v33  ;;  %1067 = vmatmul.bf16.gmra.mxu3 %v3389_v3  ;;  %v1386_v42 = vmul.f32 0.2, %v1322_v41 }
  0xeb   :  { %v1447_v38 = vmax.f32 %v1319_v33, %v1383_v34  ;;  %v823_v39 = vpop.f32.mrf.mxu2  ;;  %v727_v47 = vpop.f32.mrf.mxu0  ;;  %v1450_v3 = vmax.f32 %v1322_v41, %v1386_v42  ;;  %v2812_v34 = vor.u32 %v3110_v27, %v2811_v26 }
  0xec   :  { %v872_v45 = vpop.f32.mrf.mxu3  ;;  %v776_v51 = vpop.f32.mrf.mxu1 }
  0xed   :  { %v873_v50 = vadd.f32 %v872_v45, %v823_v39  ;;  %v3474_v52 = vpack.c.bf16 %v1447_v38, %v1443_v35  ;;  %v777_v53 = vadd.f32 %v776_v51, %v727_v47  ;;  %v3126_v35 = vld [vmem:[#allocation10 + $0xe4] sm:$0xf0]  ;;  %1913 = vmatpush.bf16.msra.mxu0 %v2812_v34  ;;  %v2803_v45 = vld [vmem:[#allocation10 + $0x50] sm:$0xf]  ;;  %v3108_v47 = vld [vmem:[#allocation10 + $0x54] sm:$0xf0] }
  0xee   :  { %v2876_v39 = vor.u32 %v3126_v35, %v2875_v29  ;;  %v2804_v42 = vor.u32 %v3108_v47, %v2803_v45  ;;  %v2779_v29 = vld [vmem:[#allocation10 + $0x20] sm:$0xf]  ;;  %v2931_v47 = vld [vmem:[#allocation10 + $0x150] sm:$0xf] }
  0xef   :  { %v1326_v54 = vadd.f32 %v3431_v8, %v777_v53  ;;  %v1323_v2 = vadd.f32 %v3438_v16, %v873_v50  ;;  %v2867_v50 = vld [vmem:[#allocation10 + $0xd0] sm:$0xf] }
  0xf0   :  { %1962 = vmatpush.bf16.msra.mxu1 %v2876_v39 }
  0xf1   :  { %v1390_v43 = vmul.f32 0.2, %v1326_v54  ;;  %v1387_v36 = vmul.f32 0.2, %v1323_v2  ;;  %1914 = vmatpush.bf16.msra.mxu0 %v2804_v42 }
  0xf3   :  { %v825_v55 = vpop.f32.mrf.mxu2  ;;  %v1454_v58 = vmax.f32 %v1326_v54, %v1390_v43  ;;  %v730_v60 = vpop.f32.mrf.mxu0  ;;  %v1451_v49 = vmax.f32 %v1323_v2, %v1387_v36  ;;  %v3124_v54 = vld [vmem:[#allocation10 + $0xd4] sm:$0xf0] }
  0xf4   :  { %v874_v59 = vpop.f32.mrf.mxu3  ;;  %v779_v7 = vpop.f32.mrf.mxu1  ;;  %v2868_v43 = vor.u32 %v3124_v54, %v2867_v50  ;;  %v3140_v50 = vld [vmem:[#allocation10 + $0x154] sm:$0xf0] }
  0xf5   :  { %v875_v5 = vadd.f32 %v874_v59, %v825_v55  ;;  %v780_v13 = vadd.f32 %v779_v7, %v730_v60  ;;  %v3478_v22 = vpack.c.bf16 %v1454_v58, %v1450_v3  ;;  %v2795_v3 = vld [vmem:[#allocation10 + $0x40] sm:$0xf]  ;;  %v3106_v58 = vld [vmem:[#allocation10 + $0x44] sm:$0xf0]  ;;  %v2932_v42 = vor.u32 %v3140_v50, %v2931_v47  ;;  %v3100_v54 = vld [vmem:[#allocation10 + $0x14] sm:$0xf0] }
  0xf6   :  { %925 = vmatmul.bf16.gmra.mxu0 %v3395_v20  ;;  %1963 = vmatpush.bf16.msra.mxu1 %v2868_v43  ;;  %v2859_v59 = vld [vmem:[#allocation10 + $0xc0] sm:$0xf]  ;;  %v3142_v7 = vld [vmem:[#allocation10 + $0x164] sm:$0xf0]  ;;  %v2796_v10 = vor.u32 %v3106_v58, %v2795_v3  ;;  %v2835_v43 = vld [vmem:[#allocation10 + $0x90] sm:$0xf] }
  0xf7   :  { %v1327_v23 = vadd.f32 %v3438_v16, %v875_v5  ;;  %974 = vmatmul.bf16.gmra.mxu1 %v3397_v21  ;;  %v1330_v30 = vadd.f32 %v3431_v8, %v780_v13  ;;  %v2939_v5 = vld [vmem:[#allocation10 + $0x160] sm:$0xf]  ;;  %v3158_v13 = vld [vmem:[#allocation10 + $0x1e4] sm:$0xf0]  ;;  %v2860_v19 = vor.u32 %v3122_v14, %v2859_v59 }
  0xf8   :  { %1023 = vmatmul.bf16.gmra.mxu2 %v3395_v20  ;;  %v2940_v12 = vor.u32 %v3142_v7, %v2939_v5  ;;  %v3004_v17 = vor.u32 %v3158_v13, %v3003_v9  ;;  %1915 = vmatpush.bf16.msra.mxu0 %v2796_v10  ;;  %v2827_v5 = vld [vmem:[#allocation10 + $0x80] sm:$0xf]  ;;  %v3156_v13 = vld [vmem:[#allocation10 + $0x1d4] sm:$0xf0]  ;;  %v3114_v14 = vld [vmem:[#allocation10 + $0x84] sm:$0xf0] }
  0xf9   :  { %v1391_v37 = vmul.f32 0.2, %v1327_v23  ;;  %1072 = vmatmul.bf16.gmra.mxu3 %v3397_v21  ;;  %v1394_v51 = vmul.f32 0.2, %v1330_v30 }
  0xfa   :  { %2011 = vmatpush.bf16.msra.mxu2 %v2940_v12  ;;  %1964 = vmatpush.bf16.msra.mxu1 %v2860_v19  ;;  %v2995_v12 = vld [vmem:[#allocation10 + $0x1d0] sm:$0xf] }
  0xfb   :  { %v1455_v24 = vmax.f32 %v1327_v23, %v1391_v37  ;;  %v828_v25 = vpop.f32.mrf.mxu2  ;;  %v732_v33 = vpop.f32.mrf.mxu0  ;;  %v1458_v60 = vmax.f32 %v1330_v30, %v1394_v51  ;;  %v2787_v23 = vld [vmem:[#allocation10 + $0x30] sm:$0xf]  ;;  %2060 = vmatpush.bf16.msra.mxu3 %v3004_v17  ;;  %v3102_v30 = vld [vmem:[#allocation10 + $0x24] sm:$0xf0]  ;;  %v2996_v17 = vor.u32 %v3156_v13, %v2995_v12 }
  0xfc   :  { %v877_v32 = vpop.f32.mrf.mxu3  ;;  %v781_v20 = vpop.f32.mrf.mxu1  ;;  %v2851_v37 = vld [vmem:[#allocation10 + $0xb0] sm:$0xf]  ;;  %v2780_v35 = vor.u32 %v3102_v30, %v2779_v29  ;;  %v2987_v29 = vld [vmem:[#allocation10 + $0x1c0] sm:$0xf] }
  0xfd   :  { %v3486_v38 = vadd.f32 %v877_v32, %v828_v25  ;;  %v3488_v21 = vpack.c.bf16 %v1455_v24, %v1451_v49  ;;  %v782_v41 = vadd.f32 %v781_v20, %v732_v33  ;;  %v2788_v49 = vor.u32 %v3104_v48, %v2787_v23  ;;  %v3120_v24 = vld [vmem:[#allocation10 + $0xb4] sm:$0xf0]  ;;  %v2843_v32 = vld [vmem:[#allocation10 + $0xa0] sm:$0xf]  ;;  %v3118_v20 = vld [vmem:[#allocation10 + $0xa4] sm:$0xf0] }
  0xfe   :  { %v2852_v25 = vor.u32 %v3120_v24, %v2851_v37  ;;  %v2771_v51 = vld [vmem:[#allocation10 + $0x10] sm:$0xf]  ;;  %2012 = vmatpush.bf16.msra.mxu2 %v2932_v42  ;;  %v2923_v23 = vld [vmem:[#allocation10 + $0x140] sm:$0xf]  ;;  %v3138_v48 = vld [vmem:[#allocation10 + $0x144] sm:$0xf0] }
  0xff   :  { %v1334_v53 = vadd.f32 %v3431_v8, %v782_v41  ;;  %1916 = vmatpush.bf16.msra.mxu0 %v2788_v49  ;;  %v2844_v41 = vor.u32 %v3118_v20, %v2843_v32  ;;  %v2772_v3 = vor.u32 %v3100_v54, %v2771_v51  ;;  %v2828_v49 = vor.u32 %v3114_v14, %v2827_v5  ;;  %v3154_v32 = vld [vmem:[#allocation10 + $0x1c4] sm:$0xf0]  ;;  %v2899_v42 = vld [vmem:[#allocation10 + $0x110] sm:$0xf]  ;;  %v3132_v54 = vld [vmem:[#allocation10 + $0x114] sm:$0xf0] }
 0x100   :  { %1965 = vmatpush.bf16.msra.mxu1 %v2852_v25  ;;  %v2924_v24 = vor.u32 %v3138_v48, %v2923_v23  ;;  %2061 = vmatpush.bf16.msra.mxu3 %v2996_v17  ;;  %v3134_v20 = vld [vmem:[#allocation10 + $0x124] sm:$0xf0]  ;;  %v2963_v17 = vld [vmem:[#allocation10 + $0x190] sm:$0xf] }
 0x101   :  { %v1398_v2 = vmul.f32 0.2, %v1334_v53 }
 0x102   :  { %2013 = vmatpush.bf16.msra.mxu2 %v2924_v24  ;;  %v2955_v24 = vld [vmem:[#allocation10 + $0x180] sm:$0xf] }
 0x103   :  { %v3491_v55 = vpop.f32.mrf.mxu2  ;;  %v1462_v61 = vmax.f32 %v1334_v53, %v1398_v2  ;;  %v735_v4 = vpop.f32.mrf.mxu0  ;;  %1917 = vmatpush.bf16.msra.mxu0 %v2780_v35  ;;  %v3116_v2 = vld [vmem:[#allocation10 + $0x94] sm:$0xf0]  ;;  %v2907_v35 = vld [vmem:[#allocation10 + $0x120] sm:$0xf] }
 0x104   :  { %v3493_v62 = vpop.f32.mrf.mxu3  ;;  %v784_v11 = vpop.f32.mrf.mxu1  ;;  %1966 = vmatpush.bf16.msra.mxu1 %v2844_v41  ;;  %v2836_v58 = vor.u32 %v3116_v2, %v2835_v43  ;;  %v2908_v51 = vor.u32 %v3134_v20, %v2907_v35 }
 0x105   :  { %v785_v15 = vadd.f32 %v784_v11, %v735_v4  ;;  %v3495_v36 = vpack.c.bf16 %v1462_v61, %v1458_v60  ;;  %v2763_v61 = vld [vmem:[#allocation10] sm:$0xf]  ;;  %v3098_v4 = vld [vmem:[#allocation10 + $0x4] sm:$0xf0] }
 0x106   :  { %930 = vmatmul.bf16.gmra.mxu0 %v3403_v56  ;;  %v2764_v19 = vor.u32 %v3098_v4, %v2763_v61  ;;  %v2900_v61 = vor.u32 %v3132_v54, %v2899_v42  ;;  %v3541_v42 = vperm.slane %v3427_v6, 2 }
 0x107   :  { %979 = vmatmul.bf16.gmra.mxu1 %v3405_v57  ;;  %v1338_v26 = vadd.f32 %v3431_v8, %v785_v15  ;;  %1918 = vmatpush.bf16.msra.mxu0 %v2772_v3  ;;  %v2971_v3 = vld [vmem:[#allocation10 + $0x1a0] sm:$0xf] }
 0x108   :  { %1028 = vmatmul.bf16.gmra.mxu2 %v3403_v56  ;;  %1967 = vmatpush.bf16.msra.mxu1 %v2836_v58  ;;  %v3150_v58 = vld [vmem:[#allocation10 + $0x1a4] sm:$0xf0] }
 0x109   :  { %1077 = vmatmul.bf16.gmra.mxu3 %v3405_v57  ;;  %v1402_v57 = vmul.f32 0.2, %v1338_v26  ;;  %v2972_v4 = vor.u32 %v3150_v58, %v2971_v3 }
 0x10b   :  { %v833_v27 = vpop.f32.mrf.mxu2  ;;  %v737_v34 = vpop.f32.mrf.mxu0  ;;  %v1466_v7 = vmax.f32 %v1338_v26, %v1402_v57  ;;  %v2915_v26 = vld [vmem:[#allocation10 + $0x130] sm:$0xf]  ;;  %1919 = vmatpush.bf16.msra.mxu0 %v2764_v19  ;;  %v3148_v19 = vld [vmem:[#allocation10 + $0x194] sm:$0xf0] }
 0x10c   :  { %v882_v33 = vpop.f32.mrf.mxu3  ;;  %v786_v56 = vpop.f32.mrf.mxu1  ;;  %1968 = vmatpush.bf16.msra.mxu1 %v2828_v49 }
 0x10d   :  { %v3502_v39 = vadd.f32 %v882_v33, %v833_v27  ;;  %v787_v45 = vadd.f32 %v786_v56, %v737_v34  ;;  %v3136_v27 = vld [vmem:[#allocation10 + $0x134] sm:$0xf0]  ;;  %v2988_v34 = vor.u32 %v3154_v32, %v2987_v29 }
 0x10e   :  { %v2916_v30 = vor.u32 %v3136_v27, %v2915_v26  ;;  %v3146_v26 = vld [vmem:[#allocation10 + $0x184] sm:$0xf0] }
 0x10f   :  { %v1342_v53 = vadd.f32 %v3431_v8, %v787_v45  ;;  %2062 = vmatpush.bf16.msra.mxu3 %v2988_v34  ;;  %v2956_v27 = vor.u32 %v3146_v26, %v2955_v24 }
 0x110   :  { %2014 = vmatpush.bf16.msra.mxu2 %v2916_v30 }
 0x111   :  { %v1406_v59 = vmul.f32 0.2, %v1342_v53 }
 0x113   :  { %v3505_v60 = vpop.f32.mrf.mxu2  ;;  %v1470_v9 = vmax.f32 %v1342_v53, %v1406_v59  ;;  %v740_v11 = vpop.f32.mrf.mxu0 }
 0x114   :  { %v3507_v10 = vpop.f32.mrf.mxu3  ;;  %v789_v15 = vpop.f32.mrf.mxu1  ;;  %2015 = vmatpush.bf16.msra.mxu2 %v2908_v51 }
 0x115   :  { %v790_v37 = vadd.f32 %v789_v15, %v740_v11  ;;  %v3509_v25 = vpack.c.bf16 %v1470_v9, %v1466_v7  ;;  %v2891_v7 = vld [vmem:[#allocation10 + $0x100] sm:$0xf]  ;;  %v3130_v9 = vld [vmem:[#allocation10 + $0x104] sm:$0xf0] }
 0x116   :  { %935 = vmatmul.bf16.gmra.mxu0 %v3411_v40  ;;  %v2892_v48 = vor.u32 %v3130_v9, %v2891_v7 }
 0x117   :  { %984 = vmatmul.bf16.gmra.mxu1 %v3413_v46  ;;  %v1346_v56 = vadd.f32 %v3431_v8, %v790_v37  ;;  %v2964_v37 = vor.u32 %v3148_v19, %v2963_v17 }
 0x118   :  { %1033 = vmatmul.bf16.gmra.mxu2 %v3411_v40  ;;  %v2979_v40 = vld [vmem:[#allocation10 + $0x1b0] sm:$0xf] }
 0x119   :  { %1082 = vmatmul.bf16.gmra.mxu3 %v3413_v46  ;;  %v3152_v46 = vld [vmem:[#allocation10 + $0x1b4] sm:$0xf0]  ;;  %v1410_v43 = vmul.f32 0.2, %v1346_v56  ;;  %2016 = vmatpush.bf16.msra.mxu2 %v2900_v61  ;;  %v3546_v61 = vperm.slane %v3427_v6, 3 }
 0x11a   :  { %v2980_v53 = vor.u32 %v3152_v46, %v2979_v40 }
 0x11b   :  { %v838_v33 = vpop.f32.mrf.mxu2  ;;  %v742_v57 = vpop.f32.mrf.mxu0  ;;  %v1474_v11 = vmax.f32 %v1346_v56, %v1410_v43 }
 0x11c   :  { %v887_v41 = vpop.f32.mrf.mxu3  ;;  %v791_v47 = vpop.f32.mrf.mxu1  ;;  %2063 = vmatpush.bf16.msra.mxu3 %v2980_v53 }
 0x11d   :  { %v3516_v45 = vadd.f32 %v887_v41, %v838_v33  ;;  %v792_v50 = vadd.f32 %v791_v47, %v742_v57  ;;  %2017 = vmatpush.bf16.msra.mxu2 %v2892_v48 }
 0x11f   :  { %v1350_v2 = vadd.f32 %v3431_v8, %v792_v50 }
 0x120   :  { %2064 = vmatpush.bf16.msra.mxu3 %v2972_v4 }
 0x121   :  { %v1414_v59 = vmul.f32 0.2, %v1350_v2 }
 0x123   :  { %v3519_v5 = vpop.f32.mrf.mxu2  ;;  %v1478_v12 = vmax.f32 %v1350_v2, %v1414_v59  ;;  %v745_v14 = vpop.f32.mrf.mxu0 }
 0x124   :  { %v3521_v13 = vpop.f32.mrf.mxu3  ;;  %v794_v15 = vpop.f32.mrf.mxu1  ;;  %2065 = vmatpush.bf16.msra.mxu3 %v2964_v37 }
 0x125   :  { %v795_v23 = vadd.f32 %v794_v15, %v745_v14  ;;  %v3523_v49 = vpack.c.bf16 %v1478_v12, %v1474_v11 }
 0x126   :  { %940 = vmatmul.bf16.gmra.mxu0 %v3419_v0 }
 0x127   :  { %989 = vmatmul.bf16.gmra.mxu1 %v3421_v1  ;;  %v1354_v30 = vadd.f32 %v3431_v8, %v795_v23 }
 0x128   :  { %1038 = vmatmul.bf16.gmra.mxu2 %v3419_v0  ;;  %2066 = vmatpush.bf16.msra.mxu3 %v2956_v27 }
 0x129   :  { %1087 = vmatmul.bf16.gmra.mxu3 %v3421_v1  ;;  %v1418_v56 = vmul.f32 0.2, %v1354_v30 }
 0x12b   :  { %v843_v29 = vpop.f32.mrf.mxu2  ;;  %v747_v33 = vpop.f32.mrf.mxu0  ;;  %v1482_v57 = vmax.f32 %v1354_v30, %v1418_v56 }
 0x12c   :  { %v892_v32 = vpop.f32.mrf.mxu3  ;;  %v796_v35 = vpop.f32.mrf.mxu1 }
 0x12d   :  { %v3530_v34 = vadd.f32 %v892_v32, %v843_v29  ;;  %v797_v20 = vadd.f32 %v796_v35, %v747_v33 }
 0x12f   :  { %v1358_v0 = vadd.f32 %v3431_v8, %v797_v20 }
 0x131   :  { %v1422_v41 = vmul.f32 0.2, %v1358_v0 }
 0x133   :  { %v3533_v1 = vpop.f32.mrf.mxu2  ;;  %v1486_v47 = vmax.f32 %v1358_v0, %v1422_v41  ;;  %v906_v46 = vpop.f32.mrf.mxu0 }
 0x134   :  { %v3535_v40 = vpop.f32.mrf.mxu3  ;;  %v955_v50 = vpop.f32.mrf.mxu1 }
 0x135   :  { %v3537_v51 = vpack.c.bf16 %v1486_v47, %v1482_v57  ;;  %v956_v53 = vadd.f32 %v955_v50, %v906_v46 }
 0x136   :  { %1920 = vmatmul.bf16.vlgmr.msra.gmra.mxu0 %v3442_v28 }
 0x137   :  { %1969 = vmatmul.bf16.vlgmr.msra.gmra.mxu1 %v3450_v44  ;;  %v1300_v54 = vadd.f32 %v3541_v42, %v956_v53 }
 0x139   :  { %v1364_v4 = vmul.f32 0.2, %v1300_v54 }
 0x13b   :  { %v1004_v8 = vpop.f32.mrf.mxu2  ;;  %v908_v2 = vpop.f32.mrf.mxu0  ;;  %v1428_v14 = vmax.f32 %v1300_v54, %v1364_v4 }
 0x13c   :  { %v1053_v43 = vpop.f32.mrf.mxu3  ;;  %v957_v3 = vpop.f32.mrf.mxu1 }
 0x13d   :  { %v958_v58 = vadd.f32 %v957_v3, %v908_v2  ;;  %v1054_v59 = vadd.f32 %v1053_v43, %v1004_v8 }
 0x13f   :  { %v1304_v7 = vadd.f32 %v3541_v42, %v958_v58  ;;  %v1301_v11 = vadd.f32 %v3546_v61, %v1054_v59 }
 0x141   :  { %v1368_v9 = vmul.f32 0.2, %v1304_v7  ;;  %v1365_v24 = vmul.f32 0.2, %v1301_v11 }
 0x143   :  { %v1006_v12 = vpop.f32.mrf.mxu2  ;;  %v1432_v15 = vmax.f32 %v1304_v7, %v1368_v9  ;;  %v911_v19 = vpop.f32.mrf.mxu0  ;;  %v1429_v29 = vmax.f32 %v1301_v11, %v1365_v24 }
 0x144   :  { %v1055_v17 = vpop.f32.mrf.mxu3  ;;  %v960_v48 = vpop.f32.mrf.mxu1 }
 0x145   :  { %v1056_v23 = vadd.f32 %v1055_v17, %v1006_v12  ;;  %v3550_v37 = vpack.c.bf16 %v1432_v15, %v1428_v14  ;;  %v961_v6 = vadd.f32 %v960_v48, %v911_v19 }
 0x146   :  { %1925 = vmatmul.bf16.gmra.mxu0 %v3454_v63 }
 0x147   :  { %v1305_v26 = vadd.f32 %v3546_v61, %v1056_v23  ;;  %1974 = vmatmul.bf16.gmra.mxu1 %v3462_v18  ;;  %2018 = vmatmul.bf16.vlgmr.msra.gmra.mxu2 %v3550_v37  ;;  %v1308_v33 = vadd.f32 %v3541_v42, %v961_v6 }
 0x149   :  { %v1369_v27 = vmul.f32 0.2, %v1305_v26  ;;  %v1372_v47 = vmul.f32 0.2, %v1308_v33 }
 0x14b   :  { %v1433_v30 = vmax.f32 %v1305_v26, %v1369_v27  ;;  %v1009_v32 = vpop.f32.mrf.mxu2  ;;  %v913_v20 = vpop.f32.mrf.mxu0  ;;  %v1436_v54 = vmax.f32 %v1308_v33, %v1372_v47 }
 0x14c   :  { %v1058_v35 = vpop.f32.mrf.mxu3  ;;  %v962_v0 = vpop.f32.mrf.mxu1 }
 0x14d   :  { %v3557_v56 = vpack.c.bf16 %v1433_v30, %v1429_v29  ;;  %v963_v41 = vadd.f32 %v962_v0, %v913_v20  ;;  %v1059_v57 = vadd.f32 %v1058_v35, %v1009_v32 }
 0x14f   :  { %2067 = vmatmul.bf16.vlgmr.msra.gmra.mxu3 %v3557_v56  ;;  %v1312_v46 = vadd.f32 %v3541_v42, %v963_v41  ;;  %v1309_v53 = vadd.f32 %v3546_v61, %v1059_v57 }
 0x151   :  { %v1376_v50 = vmul.f32 0.2, %v1312_v46  ;;  %v1373_v7 = vmul.f32 0.2, %v1309_v53 }
 0x153   :  { %v1011_v8 = vpop.f32.mrf.mxu2  ;;  %v1440_v43 = vmax.f32 %v1312_v46, %v1376_v50  ;;  %v916_v3 = vpop.f32.mrf.mxu0  ;;  %v1437_v14 = vmax.f32 %v1309_v53, %v1373_v7  ;;  %v880_v50 = vadd.f32 %v3493_v62, %v3491_v55  ;;  %v1331_v55 = vadd.f32 %v3438_v16, %v3486_v38 }
 0x154   :  { %v1060_v2 = vpop.f32.mrf.mxu3  ;;  %v965_v59 = vpop.f32.mrf.mxu1 }
 0x155   :  { %v1061_v58 = vadd.f32 %v1060_v2, %v1011_v8  ;;  %v3562_v4 = vpack.c.bf16 %v1440_v43, %v1436_v54  ;;  %v966_v11 = vadd.f32 %v965_v59, %v916_v3  ;;  %v1335_v3 = vadd.f32 %v3438_v16, %v880_v50 }
 0x156   :  { %1930 = vmatmul.bf16.gmra.mxu0 %v3466_v31 }
 0x157   :  { %v1313_v9 = vadd.f32 %v3546_v61, %v1061_v58  ;;  %1979 = vmatmul.bf16.gmra.mxu1 %v3474_v52  ;;  %2023 = vmatmul.bf16.gmra.mxu2 %v3562_v4  ;;  %v1316_v19 = vadd.f32 %v3541_v42, %v966_v11 }
 0x159   :  { %v1377_v12 = vmul.f32 0.2, %v1313_v9  ;;  %v1380_v29 = vmul.f32 0.2, %v1316_v19 }
 0x15b   :  { %v1441_v15 = vmax.f32 %v1313_v9, %v1377_v12  ;;  %v1014_v17 = vpop.f32.mrf.mxu2  ;;  %v918_v48 = vpop.f32.mrf.mxu0  ;;  %v1444_v20 = vmax.f32 %v1316_v19, %v1380_v29 }
 0x15c   :  { %v1063_v23 = vpop.f32.mrf.mxu3  ;;  %v967_v24 = vpop.f32.mrf.mxu1 }
 0x15d   :  { %v3569_v26 = vpack.c.bf16 %v1441_v15, %v1437_v14  ;;  %v968_v6 = vadd.f32 %v967_v24, %v918_v48  ;;  %v1064_v27 = vadd.f32 %v1063_v23, %v1014_v17  ;;  %v1399_v15 = vmul.f32 0.2, %v1335_v3 }
 0x15e   :  { %v1395_v23 = vmul.f32 0.2, %v1331_v55 }
 0x15f   :  { %2072 = vmatmul.bf16.gmra.mxu3 %v3569_v26  ;;  %v1320_v30 = vadd.f32 %v3541_v42, %v968_v6  ;;  %v1317_v33 = vadd.f32 %v3546_v61, %v1064_v27  ;;  %v1463_v6 = vmax.f32 %v1335_v3, %v1399_v15 }
 0x161   :  { %v1384_v32 = vmul.f32 0.2, %v1320_v30  ;;  %v1381_v8 = vmul.f32 0.2, %v1317_v33 }
 0x163   :  { %v1016_v35 = vpop.f32.mrf.mxu2  ;;  %v1448_v0 = vmax.f32 %v1320_v30, %v1384_v32  ;;  %v921_v57 = vpop.f32.mrf.mxu0  ;;  %v1445_v58 = vmax.f32 %v1317_v33, %v1381_v8  ;;  %v1459_v30 = vmax.f32 %v1331_v55, %v1395_v23  ;;  %v885_v32 = vadd.f32 %v3507_v10, %v3505_v60  ;;  %v3127_v60 = vld [vmem:[#allocation10 + $0xf4] sm:$0xf]  ;;  %v2885_v10 = vld [vmem:[#allocation10 + $0xf8] sm:$0xf0] }
 0x164   :  { %v1065_v41 = vpop.f32.mrf.mxu3  ;;  %v970_v46 = vpop.f32.mrf.mxu1 }
 0x165   :  { %v1066_v47 = vadd.f32 %v1065_v41, %v1016_v35  ;;  %v3576_v53 = vpack.c.bf16 %v1448_v0, %v1444_v20  ;;  %v971_v43 = vadd.f32 %v970_v46, %v921_v57  ;;  %v3143_v41 = vld [vmem:[#allocation10 + $0x174] sm:$0xf]  ;;  %v2949_v57 = vld [vmem:[#allocation10 + $0x178] sm:$0xf0]  ;;  %v3593_v3 = vpack.c.bf16 %v1463_v6, %v1459_v30  ;;  %v2813_v6 = vld [vmem:[#allocation10 + $0x68] sm:$0xf0] }
 0x166   :  { %1935 = vmatmul.bf16.gmra.mxu0 %v3478_v22  ;;  %v2952_v8 = vor.u32 %v3143_v41, %v2949_v57 }
 0x167   :  { %v1321_v54 = vadd.f32 %v3546_v61, %v1066_v47  ;;  %1984 = vmatmul.bf16.gmra.mxu1 %v3488_v21  ;;  %2028 = vmatmul.bf16.gmra.mxu2 %v3576_v53  ;;  %v1324_v62 = vadd.f32 %v3541_v42, %v971_v43  ;;  %v3111_v47 = vld [vmem:[#allocation10 + $0x74] sm:$0xf] }
 0x168   :  { %v3159_v43 = vld [vmem:[#allocation10 + $0x1f4] sm:$0xf]  ;;  %2206 = vmatpush.bf16.msrb.mxu2 %v2952_v8 }
 0x169   :  { %v1385_v2 = vmul.f32 0.2, %v1321_v54  ;;  %v1388_v48 = vmul.f32 0.2, %v1324_v62  ;;  %v3123_v8 = vld [vmem:[#allocation10 + $0xd4] sm:$0xf] }
 0x16b   :  { %v1449_v59 = vmax.f32 %v1321_v54, %v1385_v2  ;;  %v1019_v7 = vpop.f32.mrf.mxu2  ;;  %v923_v11 = vpop.f32.mrf.mxu0  ;;  %v1452_v33 = vmax.f32 %v1324_v62, %v1388_v48  ;;  %v2821_v54 = vld [vmem:[#allocation10 + $0x78] sm:$0xf0] }
 0x16c   :  { %v1068_v9 = vpop.f32.mrf.mxu3  ;;  %v972_v12 = vpop.f32.mrf.mxu1  ;;  %v3013_v2 = vld [vmem:[#allocation10 + $0x1f8] sm:$0xf0] }
 0x16d   :  { %v3586_v14 = vpack.c.bf16 %v1449_v59, %v1445_v58  ;;  %v973_v17 = vadd.f32 %v972_v12, %v923_v11  ;;  %v1069_v19 = vadd.f32 %v1068_v9, %v1019_v7  ;;  %v2824_v59 = vor.u32 %v3111_v47, %v2821_v54 }
 0x16e   :  { %v3016_v7 = vor.u32 %v3159_v43, %v3013_v2  ;;  %v2888_v9 = vor.u32 %v3127_v60, %v2885_v10  ;;  %v1343_v11 = vadd.f32 %v3438_v16, %v885_v32 }
 0x16f   :  { %2077 = vmatmul.bf16.gmra.mxu3 %v3586_v14  ;;  %v1328_v24 = vadd.f32 %v3541_v42, %v973_v17  ;;  %v1325_v38 = vadd.f32 %v3546_v61, %v1069_v19  ;;  %2108 = vmatpush.bf16.msrb.mxu0 %v2824_v59  ;;  %v1339_v17 = vadd.f32 %v3438_v16, %v3502_v39 }
 0x170   :  { %2255 = vmatpush.bf16.msrb.mxu3 %v3016_v7  ;;  %2157 = vmatpush.bf16.msrb.mxu1 %v2888_v9  ;;  %v2869_v7 = vld [vmem:[#allocation10 + $0xd8] sm:$0xf0] }
 0x171   :  { %v1392_v27 = vmul.f32 0.2, %v1328_v24  ;;  %v1389_v55 = vmul.f32 0.2, %v1325_v38  ;;  %v1403_v39 = vmul.f32 0.2, %v1339_v17  ;;  %v2872_v10 = vor.u32 %v3123_v8, %v2869_v7 }
 0x173   :  { %v1021_v29 = vpop.f32.mrf.mxu2  ;;  %v1456_v35 = vmax.f32 %v1328_v24, %v1392_v27  ;;  %v926_v0 = vpop.f32.mrf.mxu0  ;;  %v1453_v19 = vmax.f32 %v1325_v38, %v1389_v55  ;;  %v3109_v24 = vld [vmem:[#allocation10 + $0x64] sm:$0xf]  ;;  %v3107_v38 = vld [vmem:[#allocation10 + $0x54] sm:$0xf]  ;;  %v1467_v55 = vmax.f32 %v1339_v17, %v1403_v39  ;;  %v890_v17 = vadd.f32 %v3521_v13, %v3519_v5  ;;  %v2861_v39 = vld [vmem:[#allocation10 + $0xc8] sm:$0xf0] }
 0x174   :  { %v1070_v20 = vpop.f32.mrf.mxu3  ;;  %v975_v50 = vpop.f32.mrf.mxu1  ;;  %v3125_v27 = vld [vmem:[#allocation10 + $0xe4] sm:$0xf]  ;;  %v3119_v5 = vld [vmem:[#allocation10 + $0xb4] sm:$0xf] }
 0x175   :  { %v1071_v46 = vadd.f32 %v1070_v20, %v1021_v29  ;;  %v3595_v58 = vpack.c.bf16 %v1456_v35, %v1452_v33  ;;  %v976_v12 = vadd.f32 %v975_v50, %v926_v0  ;;  %v1407_v29 = vmul.f32 0.2, %v1343_v11  ;;  %v2877_v20 = vld [vmem:[#allocation10 + $0xe8] sm:$0xf0]  ;;  %v2805_v50 = vld [vmem:[#allocation10 + $0x58] sm:$0xf0] }
 0x176   :  { %1940 = vmatmul.bf16.gmra.mxu0 %v3495_v36  ;;  %v2816_v35 = vor.u32 %v3109_v24, %v2813_v6  ;;  %v2880_v47 = vor.u32 %v3125_v27, %v2877_v20  ;;  %v2808_v59 = vor.u32 %v3107_v38, %v2805_v50  ;;  %v3141_v27 = vld [vmem:[#allocation10 + $0x164] sm:$0xf] }
 0x177   :  { %v1329_v62 = vadd.f32 %v3546_v61, %v1071_v46  ;;  %1989 = vmatmul.bf16.gmra.mxu1 %v3593_v3  ;;  %2033 = vmatmul.bf16.gmra.mxu2 %v3595_v58  ;;  %v1332_v30 = vadd.f32 %v3541_v42, %v976_v12  ;;  %v1471_v54 = vmax.f32 %v1343_v11, %v1407_v29  ;;  %v3105_v12 = vld [vmem:[#allocation10 + $0x44] sm:$0xf]  ;;  %v2941_v29 = vld [vmem:[#allocation10 + $0x168] sm:$0xf0] }
 0x178   :  { %2109 = vmatpush.bf16.msrb.mxu0 %v2816_v35  ;;  %2158 = vmatpush.bf16.msrb.mxu1 %v2880_v47  ;;  %v3005_v47 = vld [vmem:[#allocation10 + $0x1e8] sm:$0xf0] }
 0x179   :  { %v1393_v15 = vmul.f32 0.2, %v1329_v62  ;;  %v1396_v43 = vmul.f32 0.2, %v1332_v30  ;;  %v3610_v6 = vpack.c.bf16 %v1471_v54, %v1467_v55  ;;  %v3103_v54 = vld [vmem:[#allocation10 + $0x34] sm:$0xf]  ;;  %v1351_v55 = vadd.f32 %v3438_v16, %v890_v17 }
 0x17b   :  { %v1457_v23 = vmax.f32 %v1329_v62, %v1393_v15  ;;  %v1024_v48 = vpop.f32.mrf.mxu2  ;;  %v928_v33 = vpop.f32.mrf.mxu0  ;;  %v2797_v15 = vld [vmem:[#allocation10 + $0x48] sm:$0xf0]  ;;  %v1415_v17 = vmul.f32 0.2, %v1351_v55 }
 0x17c   :  { %v1073_v32 = vpop.f32.mrf.mxu3  ;;  %v977_v41 = vpop.f32.mrf.mxu1  ;;  %2110 = vmatpush.bf16.msrb.mxu0 %v2808_v59  ;;  %2159 = vmatpush.bf16.msrb.mxu1 %v2872_v10  ;;  %v1347_v10 = vadd.f32 %v3438_v16, %v3516_v45 }
 0x17d   :  { %v1074_v0 = vadd.f32 %v1073_v32, %v1024_v48  ;;  %v3605_v57 = vpack.c.bf16 %v1457_v23, %v1453_v19  ;;  %v978_v46 = vadd.f32 %v977_v41, %v928_v33  ;;  %v3121_v19 = vld [vmem:[#allocation10 + $0xc4] sm:$0xf]  ;;  %v1460_v23 = vmax.f32 %v1332_v30, %v1396_v43  ;;  %v2789_v43 = vld [vmem:[#allocation10 + $0x38] sm:$0xf0] }
 0x17e   :  { %v3157_v32 = vld [vmem:[#allocation10 + $0x1e4] sm:$0xf]  ;;  %v2800_v33 = vor.u32 %v3105_v12, %v2797_v15  ;;  %v2944_v41 = vor.u32 %v3141_v27, %v2941_v29  ;;  %v2864_v50 = vor.u32 %v3121_v19, %v2861_v39  ;;  %v2792_v13 = vor.u32 %v3103_v54, %v2789_v43  ;;  %v2845_v29 = vld [vmem:[#allocation10 + $0xa8] sm:$0xf0]  ;;  %v3099_v39 = vld [vmem:[#allocation10 + $0x14] sm:$0xf] }
 0x17f   :  { %2082 = vmatmul.bf16.gmra.mxu3 %v3605_v57  ;;  %v1336_v2 = vadd.f32 %v3541_v42, %v978_v46  ;;  %v1333_v60 = vadd.f32 %v3546_v61, %v1074_v0  ;;  %v3008_v38 = vor.u32 %v3157_v32, %v3005_v47  ;;  %v3101_v19 = vld [vmem:[#allocation10 + $0x24] sm:$0xf]  ;;  %v2933_v47 = vld [vmem:[#allocation10 + $0x158] sm:$0xf0] }
 0x180   :  { %2111 = vmatpush.bf16.msrb.mxu0 %v2800_v33  ;;  %2207 = vmatpush.bf16.msrb.mxu2 %v2944_v41  ;;  %v2837_v54 = vld [vmem:[#allocation10 + $0x98] sm:$0xf0] }
 0x181   :  { %v1400_v62 = vmul.f32 0.2, %v1336_v2  ;;  %v1397_v35 = vmul.f32 0.2, %v1333_v60  ;;  %2256 = vmatpush.bf16.msrb.mxu3 %v3008_v38  ;;  %2160 = vmatpush.bf16.msrb.mxu1 %v2864_v50  ;;  %v2773_v50 = vld [vmem:[#allocation10 + $0x18] sm:$0xf0] }
 0x182   :  { %v2776_v43 = vor.u32 %v3099_v39, %v2773_v50  ;;  %v2917_v50 = vld [vmem:[#allocation10 + $0x138] sm:$0xf0] }
 0x183   :  { %v1026_v9 = vpop.f32.mrf.mxu2  ;;  %v1464_v48 = vmax.f32 %v1336_v2, %v1400_v62  ;;  %v931_v11 = vpop.f32.mrf.mxu0  ;;  %v2853_v2 = vld [vmem:[#allocation10 + $0xb8] sm:$0xf0] }
 0x184   :  { %v1075_v24 = vpop.f32.mrf.mxu3  ;;  %v980_v0 = vpop.f32.mrf.mxu1  ;;  %v2856_v7 = vor.u32 %v3119_v5, %v2853_v2  ;;  %2112 = vmatpush.bf16.msrb.mxu0 %v2792_v13  ;;  %v1479_v13 = vmax.f32 %v1351_v55, %v1415_v17  ;;  %v2829_v17 = vld [vmem:[#allocation10 + $0x88] sm:$0xf0] }
 0x185   :  { %v1076_v20 = vadd.f32 %v1075_v24, %v1026_v9  ;;  %v981_v46 = vadd.f32 %v980_v0, %v931_v11  ;;  %v3614_v30 = vpack.c.bf16 %v1464_v48, %v1460_v23  ;;  %v1461_v9 = vmax.f32 %v1333_v60, %v1397_v35  ;;  %v2781_v23 = vld [vmem:[#allocation10 + $0x28] sm:$0xf0]  ;;  %v3117_v48 = vld [vmem:[#allocation10 + $0xa4] sm:$0xf]  ;;  %v3139_v35 = vld [vmem:[#allocation10 + $0x154] sm:$0xf] }
 0x186   :  { %1945 = vmatmul.bf16.gmra.mxu0 %v3509_v25  ;;  %v2784_v27 = vor.u32 %v3101_v19, %v2781_v23  ;;  %2161 = vmatpush.bf16.msrb.mxu1 %v2856_v7  ;;  %v2848_v45 = vor.u32 %v3117_v48, %v2845_v29  ;;  %v2936_v38 = vor.u32 %v3139_v35, %v2933_v47  ;;  %v2997_v29 = vld [vmem:[#allocation10 + $0x1d8] sm:$0xf0]  ;;  %v3137_v35 = vld [vmem:[#allocation10 + $0x144] sm:$0xf] }
 0x187   :  { %v1337_v8 = vadd.f32 %v3546_v61, %v1076_v20  ;;  %1994 = vmatmul.bf16.gmra.mxu1 %v3610_v6  ;;  %2038 = vmatmul.bf16.gmra.mxu2 %v3614_v30  ;;  %v1340_v62 = vadd.f32 %v3541_v42, %v981_v46  ;;  %v1411_v20 = vmul.f32 0.2, %v1347_v10 }
 0x188   :  { %2113 = vmatpush.bf16.msrb.mxu0 %v2784_v27  ;;  %2208 = vmatpush.bf16.msrb.mxu2 %v2936_v38  ;;  %v3155_v27 = vld [vmem:[#allocation10 + $0x1d4] sm:$0xf] }
 0x189   :  { %v1401_v59 = vmul.f32 0.2, %v1337_v8  ;;  %v1404_v0 = vmul.f32 0.2, %v1340_v62  ;;  %v1475_v19 = vmax.f32 %v1347_v10, %v1411_v20  ;;  %v3135_v38 = vld [vmem:[#allocation10 + $0x134] sm:$0xf] }
 0x18a   :  { %2162 = vmatpush.bf16.msrb.mxu1 %v2848_v45 }
 0x18b   :  { %v1465_v12 = vmax.f32 %v1337_v8, %v1401_v59  ;;  %v1029_v15 = vpop.f32.mrf.mxu2  ;;  %v933_v11 = vpop.f32.mrf.mxu0  ;;  %v3115_v8 = vld [vmem:[#allocation10 + $0x94] sm:$0xf]  ;;  %v1468_v23 = vmax.f32 %v1340_v62, %v1404_v0  ;;  %v3631_v47 = vpack.c.bf16 %v1479_v13, %v1475_v19  ;;  %v2925_v62 = vld [vmem:[#allocation10 + $0x148] sm:$0xf0]  ;;  %v1355_v19 = vadd.f32 %v3438_v16, %v3530_v34  ;;  %v3149_v34 = vld [vmem:[#allocation10 + $0x1a4] sm:$0xf] }
 0x18c   :  { %v1078_v24 = vpop.f32.mrf.mxu3  ;;  %v982_v32 = vpop.f32.mrf.mxu1  ;;  %v2840_v5 = vor.u32 %v3115_v8, %v2837_v54  ;;  %2114 = vmatpush.bf16.msrb.mxu0 %v2776_v43  ;;  %v2989_v54 = vld [vmem:[#allocation10 + $0x1c8] sm:$0xf0] }
 0x18d   :  { %v3624_v33 = vpack.c.bf16 %v1465_v12, %v1461_v9  ;;  %v983_v41 = vadd.f32 %v982_v32, %v933_v11  ;;  %v1079_v60 = vadd.f32 %v1078_v24, %v1029_v15  ;;  %v3097_v9 = vld [vmem:[#allocation10 + $0x4] sm:$0xf]  ;;  %v2765_v12 = vld [vmem:[#allocation10 + $0x8] sm:$0xf0] }
 0x18e   :  { %v3113_v15 = vld [vmem:[#allocation10 + $0x84] sm:$0xf]  ;;  %2163 = vmatpush.bf16.msrb.mxu1 %v2840_v5  ;;  %v2768_v55 = vor.u32 %v3097_v9, %v2765_v12  ;;  %v2920_v5 = vor.u32 %v3135_v38, %v2917_v50 }
 0x18f   :  { %2087 = vmatmul.bf16.gmra.mxu3 %v3624_v33  ;;  %v1344_v46 = vadd.f32 %v3541_v42, %v983_v41  ;;  %v1341_v59 = vadd.f32 %v3546_v61, %v1079_v60  ;;  %v3000_v41 = vor.u32 %v3155_v27, %v2997_v29  ;;  %v895_v60 = vadd.f32 %v3535_v40, %v3533_v1  ;;  %v3153_v40 = vld [vmem:[#allocation10 + $0x1c4] sm:$0xf]  ;;  %v3151_v29 = vld [vmem:[#allocation10 + $0x1b4] sm:$0xf] }
 0x190   :  { %v2832_v10 = vor.u32 %v3113_v15, %v2829_v17  ;;  %2115 = vmatpush.bf16.msrb.mxu0 %v2768_v55  ;;  %v2992_v13 = vor.u32 %v3153_v40, %v2989_v54  ;;  %v3133_v12 = vld [vmem:[#allocation10 + $0x124] sm:$0xf]  ;;  %v2909_v15 = vld [vmem:[#allocation10 + $0x128] sm:$0xf0] }
 0x191   :  { %v1408_v2 = vmul.f32 0.2, %v1344_v46  ;;  %v1405_v20 = vmul.f32 0.2, %v1341_v59  ;;  %2257 = vmatpush.bf16.msrb.mxu3 %v3000_v41  ;;  %v1359_v43 = vadd.f32 %v3438_v16, %v895_v60  ;;  %v2901_v16 = vld [vmem:[#allocation10 + $0x118] sm:$0xf0] }
 0x192   :  { %2164 = vmatpush.bf16.msrb.mxu1 %v2832_v10  ;;  %v1419_v60 = vmul.f32 0.2, %v1355_v19  ;;  %v3129_v40 = vld [vmem:[#allocation10 + $0x104] sm:$0xf]  ;;  %v2893_v54 = vld [vmem:[#allocation10 + $0x108] sm:$0xf0] }
 0x193   :  { %v1031_v7 = vpop.f32.mrf.mxu2  ;;  %v1472_v48 = vmax.f32 %v1344_v46, %v1408_v2  ;;  %v936_v11 = vpop.f32.mrf.mxu0  ;;  %v2928_v46 = vor.u32 %v3137_v35, %v2925_v62  ;;  %v1469_v2 = vmax.f32 %v1341_v59, %v1405_v20  ;;  %v2912_v59 = vor.u32 %v3133_v12, %v2909_v15  ;;  %v3131_v35 = vld [vmem:[#allocation10 + $0x114] sm:$0xf]  ;;  %v2973_v20 = vld [vmem:[#allocation10 + $0x1a8] sm:$0xf0] }
 0x194   :  { %v1080_v24 = vpop.f32.mrf.mxu3  ;;  %v985_v45 = vpop.f32.mrf.mxu1  ;;  %v2904_v50 = vor.u32 %v3131_v35, %v2901_v16 }
 0x195   :  { %v1081_v32 = vadd.f32 %v1080_v24, %v1031_v7  ;;  %v3633_v39 = vpack.c.bf16 %v1472_v48, %v1468_v23  ;;  %v986_v8 = vadd.f32 %v985_v45, %v936_v11  ;;  %2209 = vmatpush.bf16.msrb.mxu2 %v2928_v46  ;;  %2258 = vmatpush.bf16.msrb.mxu3 %v2992_v13  ;;  %v1423_v45 = vmul.f32 0.2, %v1359_v43 }
 0x196   :  { %1950 = vmatmul.bf16.gmra.mxu0 %v3523_v49 }
 0x197   :  { %v1345_v0 = vadd.f32 %v3546_v61, %v1081_v32  ;;  %1999 = vmatmul.bf16.gmra.mxu1 %v3631_v47  ;;  %2043 = vmatmul.bf16.gmra.mxu2 %v3633_v39  ;;  %v1348_v23 = vadd.f32 %v3541_v42, %v986_v8  ;;  %v2981_v32 = vld [vmem:[#allocation10 + $0x1b8] sm:$0xf0]  ;;  %v1487_v46 = vmax.f32 %v1359_v43, %v1423_v45 }
 0x198   :  { %v2984_v55 = vor.u32 %v3151_v29, %v2981_v32  ;;  %v2896_v29 = vor.u32 %v3129_v40, %v2893_v54 }
 0x199   :  { %v1409_v1 = vmul.f32 0.2, %v1345_v0  ;;  %2210 = vmatpush.bf16.msrb.mxu2 %v2920_v5  ;;  %v1412_v10 = vmul.f32 0.2, %v1348_v23  ;;  %v1483_v5 = vmax.f32 %v1355_v19, %v1419_v60 }
 0x19a   :  { %2259 = vmatpush.bf16.msrb.mxu3 %v2984_v55  ;;  %v2957_v55 = vld [vmem:[#allocation10 + $0x188] sm:$0xf0] }
 0x19b   :  { %v1473_v7 = vmax.f32 %v1345_v0, %v1409_v1  ;;  %v1034_v9 = vpop.f32.mrf.mxu2  ;;  %v938_v24 = vpop.f32.mrf.mxu0  ;;  %v2976_v0 = vor.u32 %v3149_v34, %v2973_v20  ;;  %v1476_v13 = vmax.f32 %v1348_v23, %v1412_v10 }
 0x19c   :  { %v1083_v48 = vpop.f32.mrf.mxu3  ;;  %v987_v11 = vpop.f32.mrf.mxu1 }
 0x19d   :  { %v3643_v27 = vpack.c.bf16 %v1473_v7, %v1469_v2  ;;  %v988_v41 = vadd.f32 %v987_v11, %v938_v24  ;;  %v1084_v17 = vadd.f32 %v1083_v48, %v1034_v9  ;;  %2211 = vmatpush.bf16.msrb.mxu2 %v2912_v59  ;;  %v3147_v48 = vld [vmem:[#allocation10 + $0x194] sm:$0xf]  ;;  %v2965_v24 = vld [vmem:[#allocation10 + $0x198] sm:$0xf0]  ;;  %v3648_v11 = vpack.c.bf16 %v1487_v46, %v1483_v5  ;;  %v3145_v59 = vld [vmem:[#allocation10 + $0x184] sm:$0xf] }
 0x19e   :  { %2260 = vmatpush.bf16.msrb.mxu3 %v2976_v0  ;;  %v2968_v32 = vor.u32 %v3147_v48, %v2965_v24 }
 0x19f   :  { %2092 = vmatmul.bf16.gmra.mxu3 %v3643_v27  ;;  %v1352_v62 = vadd.f32 %v3541_v42, %v988_v41  ;;  %v1349_v8 = vadd.f32 %v3546_v61, %v1084_v17  ;;  %v2960_v17 = vor.u32 %v3145_v59, %v2957_v55 }
 0x1a1   :  { %v1416_v38 = vmul.f32 0.2, %v1352_v62  ;;  %2212 = vmatpush.bf16.msrb.mxu2 %v2904_v50  ;;  %v1413_v45 = vmul.f32 0.2, %v1349_v8 }
 0x1a2   :  { %2261 = vmatpush.bf16.msrb.mxu3 %v2968_v32 }
 0x1a3   :  { %v1036_v1 = vpop.f32.mrf.mxu2  ;;  %v1480_v2 = vmax.f32 %v1352_v62, %v1416_v38  ;;  %v941_v9 = vpop.f32.mrf.mxu0  ;;  %v1477_v35 = vmax.f32 %v1349_v8, %v1413_v45  ;;  %v3662_v38 = vld [vmem:[%s3864_s4] sm:$0x3] }
 0x1a4   :  { %v1085_v7 = vpop.f32.mrf.mxu3  ;;  %v990_v15 = vpop.f32.mrf.mxu1  ;;  %v3667_v40 = vperm.slane %v3662_v38, 0 }
 0x1a5   :  { %v1086_v12 = vadd.f32 %v1085_v7, %v1036_v1  ;;  %v3650_v43 = vpack.c.bf16 %v1480_v2, %v1476_v13  ;;  %v991_v19 = vadd.f32 %v990_v15, %v941_v9  ;;  %2213 = vmatpush.bf16.msrb.mxu2 %v2896_v29 }
 0x1a6   :  { %1955 = vmatmul.bf16.gmra.mxu0 %v3537_v51  ;;  %2262 = vmatpush.bf16.msrb.mxu3 %v2960_v17 }
 0x1a7   :  { %v1353_v41 = vadd.f32 %v3546_v61, %v1086_v12  ;;  %2004 = vmatmul.bf16.gmra.mxu1 %v3648_v11  ;;  %2048 = vmatmul.bf16.gmra.mxu2 %v3650_v43  ;;  %v1356_v60 = vadd.f32 %v3541_v42, %v991_v19 }
 0x1a9   :  { %v1417_v23 = vmul.f32 0.2, %v1353_v41  ;;  %v1420_v8 = vmul.f32 0.2, %v1356_v60 }
 0x1ab   :  { %v1481_v16 = vmax.f32 %v1353_v41, %v1417_v23  ;;  %v1039_v34 = vpop.f32.mrf.mxu2  ;;  %v943_v62 = vpop.f32.mrf.mxu0  ;;  %v1484_v2 = vmax.f32 %v1356_v60, %v1420_v8 }
 0x1ac   :  { %v1088_v10 = vpop.f32.mrf.mxu3  ;;  %v992_v20 = vpop.f32.mrf.mxu1 }
 0x1ad   :  { %v3657_v0 = vpack.c.bf16 %v1481_v16, %v1477_v35  ;;  %v993_v46 = vadd.f32 %v992_v20, %v943_v62  ;;  %v1089_v50 = vadd.f32 %v1088_v10, %v1039_v34 }
 0x1af   :  { %2097 = vmatmul.bf16.gmra.mxu3 %v3657_v0  ;;  %v1360_v1 = vadd.f32 %v3541_v42, %v993_v46  ;;  %v1357_v5 = vadd.f32 %v3546_v61, %v1089_v50 }
 0x1b1   :  { %v1424_v54 = vmul.f32 0.2, %v1360_v1  ;;  %v1421_v32 = vmul.f32 0.2, %v1357_v5 }
 0x1b3   :  { %v1041_v13 = vpop.f32.mrf.mxu2  ;;  %v1488_v7 = vmax.f32 %v1360_v1, %v1424_v54  ;;  %v1921_v12 = vpop.f32.mrf.mxu0  ;;  %v1485_v19 = vmax.f32 %v1357_v5, %v1421_v32 }
 0x1b4   :  { %v1090_v9 = vpop.f32.mrf.mxu3  ;;  %v1922_v48 = vadd.f32 %v1921_v12, %v3667_v40  ;;  %v1970_v24 = vpop.f32.mrf.mxu1 }
 0x1b5   :  { %v1091_v15 = vadd.f32 %v1090_v9, %v1041_v13  ;;  %v3671_v29 = vpack.c.bf16 %v1488_v7, %v1484_v2 }
 0x1b6   :  { %v1971_v45 = vadd.f32 %v1970_v24, %v1922_v48  ;;  %2116 = vmatmul.bf16.vlgmr.msrb.gmra.mxu0 %v3442_v28 }
 0x1b7   :  { %v1361_v42 = vadd.f32 %v3546_v61, %v1091_v15  ;;  %2053 = vmatmul.bf16.gmra.mxu2 %v3671_v29  ;;  %2165 = vmatmul.bf16.vlgmr.msrb.gmra.mxu1 %v3450_v44 }
 0x1b9   :  { %v1425_v41 = vmul.f32 0.2, %v1361_v42 }
 0x1bb   :  { %v1489_v23 = vmax.f32 %v1361_v42, %v1425_v41  ;;  %v1923_v59 = vpop.f32.mrf.mxu0 }
 0x1bc   :  { %v1924_v55 = vadd.f32 %v1923_v59, %v3667_v40  ;;  %v1972_v17 = vpop.f32.mrf.mxu1 }
 0x1bd   :  { %v3678_v35 = vpack.c.bf16 %v1489_v23, %v1485_v19 }
 0x1be   :  { %v1973_v16 = vadd.f32 %v1972_v17, %v1924_v55 }
 0x1bf   :  { %2102 = vmatmul.bf16.gmra.mxu3 %v3678_v35 }
 0x1c3   :  { %v1926_v61 = vpop.f32.mrf.mxu0 }
 0x1c4   :  { %v1927_v34 = vadd.f32 %v1926_v61, %v3667_v40  ;;  %v1975_v28 = vpop.f32.mrf.mxu1 }
 0x1c6   :  { %v1976_v60 = vadd.f32 %v1975_v28, %v1927_v34  ;;  %2121 = vmatmul.bf16.gmra.mxu0 %v3454_v63 }
 0x1c7   :  { %2170 = vmatmul.bf16.gmra.mxu1 %v3462_v18  ;;  %2214 = vmatmul.bf16.vlgmr.msrb.gmra.mxu2 %v3550_v37 }
 0x1ca   :  { %v2019_v44 = vpop.f32.mrf.mxu2 }
 0x1cb   :  { %v2020_v10 = vadd.f32 %v2019_v44, %v1971_v45  ;;  %v1928_v62 = vpop.f32.mrf.mxu0 }
 0x1cc   :  { %v1929_v20 = vadd.f32 %v1928_v62, %v3667_v40  ;;  %v1977_v46 = vpop.f32.mrf.mxu1 }
 0x1ce   :  { %v1978_v50 = vadd.f32 %v1977_v46, %v1929_v20 }
 0x1cf   :  { %2263 = vmatmul.bf16.vlgmr.msrb.gmra.mxu3 %v3557_v56 }
 0x1d2   :  { %v2068_v8 = vpop.f32.mrf.mxu3  ;;  %v2021_v54 = vpop.f32.mrf.mxu2 }
 0x1d3   :  { %v3687_v1 = vadd.f32 %v2068_v8, %v2020_v10  ;;  %v2022_v5 = vadd.f32 %v2021_v54, %v1973_v16  ;;  %v1931_v13 = vpop.f32.mrf.mxu0 }
 0x1d4   :  { %v1932_v63 = vadd.f32 %v1931_v13, %v3667_v40  ;;  %v1980_v18 = vpop.f32.mrf.mxu1 }
 0x1d6   :  { %v1981_v2 = vadd.f32 %v1980_v18, %v1932_v63  ;;  %2126 = vmatmul.bf16.gmra.mxu0 %v3466_v31 }
 0x1d7   :  { %2175 = vmatmul.bf16.gmra.mxu1 %v3474_v52  ;;  %2219 = vmatmul.bf16.gmra.mxu2 %v3562_v4 }
 0x1da   :  { %v2070_v37 = vpop.f32.mrf.mxu3  ;;  %v2024_v56 = vpop.f32.mrf.mxu2 }
 0x1db   :  { %v3693_v7 = vadd.f32 %v2070_v37, %v2022_v5  ;;  %v2025_v9 = vadd.f32 %v2024_v56, %v1976_v60  ;;  %v1933_v12 = vpop.f32.mrf.mxu0 }
 0x1dc   :  { %v1934_v15 = vadd.f32 %v1933_v12, %v3667_v40  ;;  %v1982_v48 = vpop.f32.mrf.mxu1 }
 0x1de   :  { %v1983_v24 = vadd.f32 %v1982_v48, %v1934_v15 }
 0x1df   :  { %2268 = vmatmul.bf16.gmra.mxu3 %v3569_v26 }
 0x1e2   :  { %v2073_v32 = vpop.f32.mrf.mxu3  ;;  %v2026_v31 = vpop.f32.mrf.mxu2 }
 0x1e3   :  { %v3697_v42 = vadd.f32 %v2073_v32, %v2025_v9  ;;  %v2027_v45 = vadd.f32 %v2026_v31, %v1978_v50  ;;  %v1936_v52 = vpop.f32.mrf.mxu0 }
 0x1e4   :  { %v1937_v4 = vadd.f32 %v1936_v52, %v3667_v40  ;;  %v1985_v41 = vpop.f32.mrf.mxu1 }
 0x1e6   :  { %v1986_v19 = vadd.f32 %v1985_v41, %v1937_v4  ;;  %2131 = vmatmul.bf16.gmra.mxu0 %v3478_v22 }
 0x1e7   :  { %2180 = vmatmul.bf16.gmra.mxu1 %v3488_v21  ;;  %2224 = vmatmul.bf16.gmra.mxu2 %v3576_v53 }
 0x1ea   :  { %v2075_v23 = vpop.f32.mrf.mxu3  ;;  %v2029_v26 = vpop.f32.mrf.mxu2 }
 0x1eb   :  { %v3703_v59 = vadd.f32 %v2075_v23, %v2027_v45  ;;  %v2030_v55 = vadd.f32 %v2029_v26, %v1981_v2  ;;  %v1938_v17 = vpop.f32.mrf.mxu0 }
 0x1ec   :  { %v1939_v16 = vadd.f32 %v1938_v17, %v3667_v40  ;;  %v1987_v61 = vpop.f32.mrf.mxu1 }
 0x1ee   :  { %v1988_v34 = vadd.f32 %v1987_v61, %v1939_v16 }
 0x1ef   :  { %2273 = vmatmul.bf16.gmra.mxu3 %v3586_v14 }
 0x1f2   :  { %v2078_v28 = vpop.f32.mrf.mxu3  ;;  %v2031_v22 = vpop.f32.mrf.mxu2 }
 0x1f3   :  { %v3707_v60 = vadd.f32 %v2078_v28, %v2030_v55  ;;  %v2032_v44 = vadd.f32 %v2031_v22, %v1983_v24  ;;  %v1941_v21 = vpop.f32.mrf.mxu0 }
 0x1f4   :  { %v1990_v10 = vpop.f32.mrf.mxu1  ;;  %v1942_v2 = vadd.f32 %v1941_v21, %v3667_v40 }
 0x1f6   :  { %2136 = vmatmul.bf16.gmra.mxu0 %v3495_v36  ;;  %v1991_v12 = vadd.f32 %v1990_v10, %v1942_v2 }
 0x1f7   :  { %2185 = vmatmul.bf16.gmra.mxu1 %v3593_v3  ;;  %2229 = vmatmul.bf16.gmra.mxu2 %v3595_v58 }
 0x1fa   :  { %v2080_v53 = vpop.f32.mrf.mxu3  ;;  %v2034_v20 = vpop.f32.mrf.mxu2 }
 0x1fb   :  { %v3712_v62 = vadd.f32 %v2080_v53, %v2032_v44  ;;  %v2035_v46 = vadd.f32 %v2034_v20, %v1986_v19  ;;  %v1943_v50 = vpop.f32.mrf.mxu0 }
 0x1fc   :  { %v1944_v14 = vadd.f32 %v1943_v50, %v3667_v40  ;;  %v1992_v8 = vpop.f32.mrf.mxu1 }
 0x1fe   :  { %v1993_v54 = vadd.f32 %v1992_v8, %v1944_v14 }
 0x1ff   :  { %2278 = vmatmul.bf16.gmra.mxu3 %v3605_v57 }
 0x202   :  { %v2083_v5 = vpop.f32.mrf.mxu3  ;;  %v2036_v36 = vpop.f32.mrf.mxu2 }
 0x203   :  { %v3716_v13 = vadd.f32 %v2083_v5, %v2035_v46  ;;  %v2037_v63 = vadd.f32 %v2036_v36, %v1988_v34  ;;  %v3718_v3 = vpop.f32.mrf.mxu0 }
 0x204   :  { %v3720_v58 = vpop.f32.mrf.mxu1 }
 0x206   :  { %2141 = vmatmul.bf16.gmra.mxu0 %v3509_v25 }
 0x207   :  { %2190 = vmatmul.bf16.gmra.mxu1 %v3610_v6  ;;  %2234 = vmatmul.bf16.gmra.mxu2 %v3614_v30 }
 0x20a   :  { %v2085_v18 = vpop.f32.mrf.mxu3  ;;  %v2039_v57 = vpop.f32.mrf.mxu2 }
 0x20b   :  { %v3726_v37 = vadd.f32 %v2085_v18, %v2037_v63  ;;  %v3728_v56 = vpop.f32.mrf.mxu0  ;;  %v2040_v15 = vadd.f32 %v2039_v57, %v1991_v12 }
 0x20c   :  { %v3730_v9 = vpop.f32.mrf.mxu1 }
 0x20f   :  { %2283 = vmatmul.bf16.gmra.mxu3 %v3624_v33 }
 0x212   :  { %v2088_v48 = vpop.f32.mrf.mxu3  ;;  %v2041_v6 = vpop.f32.mrf.mxu2 }
 0x213   :  { %v3733_v25 = vadd.f32 %v2088_v48, %v2040_v15  ;;  %v2042_v24 = vadd.f32 %v2041_v6, %v1993_v54  ;;  %v1951_v30 = vpop.f32.mrf.mxu0 }
 0x214   :  { %v3735_v32 = vpop.f32.mrf.mxu1  ;;  %v1952_v18 = vadd.f32 %v1951_v30, %v3667_v40 }
 0x216   :  { %2146 = vmatmul.bf16.gmra.mxu0 %v3523_v49 }
 0x217   :  { %2195 = vmatmul.bf16.gmra.mxu1 %v3631_v47  ;;  %2239 = vmatmul.bf16.gmra.mxu2 %v3633_v39 }
 0x21a   :  { %v2090_v31 = vpop.f32.mrf.mxu3  ;;  %v3742_v52 = vpop.f32.mrf.mxu2 }
 0x21b   :  { %v3740_v45 = vadd.f32 %v2090_v31, %v2042_v24  ;;  %v1953_v33 = vpop.f32.mrf.mxu0 }
 0x21c   :  { %v2002_v4 = vpop.f32.mrf.mxu1 }
 0x21f   :  { %2288 = vmatmul.bf16.gmra.mxu3 %v3643_v27  ;;  %v3756_v27 = vperm.slane %v3662_v38, 1 }
 0x222   :  { %v3745_v41 = vpop.f32.mrf.mxu3  ;;  %v3747_v19 = vpop.f32.mrf.mxu2 }
 0x223   :  { %v1956_v23 = vpop.f32.mrf.mxu0 }
 0x224   :  { %v2005_v26 = vpop.f32.mrf.mxu1  ;;  %v1957_v38 = vadd.f32 %v1956_v23, %v3667_v40 }
 0x226   :  { %2151 = vmatmul.bf16.gmra.mxu0 %v3537_v51  ;;  %v2006_v8 = vadd.f32 %v2005_v26, %v1957_v38  ;;  %v2001_v26 = vadd.f32 %v3735_v32, %v1952_v18 }
 0x227   :  { %2200 = vmatmul.bf16.gmra.mxu1 %v3648_v11  ;;  %2244 = vmatmul.bf16.gmra.mxu2 %v3650_v43 }
 0x22a   :  { %v3752_v49 = vpop.f32.mrf.mxu3  ;;  %v2049_v47 = vpop.f32.mrf.mxu2 }
 0x22b   :  { %v1958_v39 = vpop.f32.mrf.mxu0 }
 0x22c   :  { %v2007_v55 = vpop.f32.mrf.mxu1  ;;  %v1959_v53 = vadd.f32 %v1958_v39, %v3667_v40 }
 0x22e   :  { %v2008_v54 = vadd.f32 %v2007_v55, %v1959_v53 }
 0x22f   :  { %2293 = vmatmul.bf16.gmra.mxu3 %v3657_v0 }
 0x232   :  { %v2098_v17 = vpop.f32.mrf.mxu3  ;;  %v2051_v16 = vpop.f32.mrf.mxu2 }
 0x233   :  { %v2117_v61 = vpop.f32.mrf.mxu0 }
 0x234   :  { %v2118_v34 = vadd.f32 %v2117_v61, %v3756_v27  ;;  %v2166_v51 = vpop.f32.mrf.mxu1 }
 0x236   :  { %v2167_v28 = vadd.f32 %v2166_v51, %v2118_v34  ;;  %v1947_v51 = vadd.f32 %v3718_v3, %v3667_v40 }
 0x237   :  { %2249 = vmatmul.bf16.gmra.mxu2 %v3671_v29  ;;  %v1954_v29 = vadd.f32 %v1953_v33, %v3667_v40  ;;  %v1949_v33 = vadd.f32 %v3728_v56, %v3667_v40 }
 0x238   :  { %v1996_v53 = vadd.f32 %v3720_v58, %v1947_v51  ;;  %v2316_v51 = vmul.f32 0.2, %v3716_v13 }
 0x239   :  { %v2003_v2 = vadd.f32 %v2002_v4, %v1954_v29  ;;  %v2050_v4 = vadd.f32 %v2049_v47, %v2001_v26 }
 0x23a   :  { %v2100_v11 = vpop.f32.mrf.mxu3  ;;  %v2054_v43 = vpop.f32.mrf.mxu2 }
 0x23b   :  { %v2119_v22 = vpop.f32.mrf.mxu0  ;;  %v2055_v36 = vadd.f32 %v2054_v43, %v2006_v8  ;;  %v2052_v24 = vadd.f32 %v2051_v16, %v2003_v2  ;;  %v1998_v16 = vadd.f32 %v3730_v9, %v1949_v33  ;;  %v2099_v43 = vadd.f32 %v2098_v17, %v2050_v4 }
 0x23c   :  { %v2120_v44 = vadd.f32 %v2119_v22, %v3756_v27  ;;  %v2168_v21 = vpop.f32.mrf.mxu1 }
 0x23d   :  { %v2101_v55 = vadd.f32 %v2100_v11, %v2052_v24  ;;  %v2047_v11 = vadd.f32 %v3747_v19, %v1998_v16  ;;  %v2328_v3 = vmul.f32 0.2, %v2099_v43 }
 0x23e   :  { %v2169_v10 = vadd.f32 %v2168_v21, %v2120_v44 }
 0x23f   :  { %2298 = vmatmul.bf16.gmra.mxu3 %v3678_v35  ;;  %v2330_v22 = vmul.f32 0.2, %v2101_v55  ;;  %v2096_v40 = vadd.f32 %v3752_v49, %v2047_v11 }
 0x241   :  { %v2362_v9 = vmax.f32 %v2101_v55, %v2330_v22 }
 0x242   :  { %v2103_v0 = vpop.f32.mrf.mxu3  ;;  %v2056_v20 = vpop.f32.mrf.mxu2 }
 0x243   :  { %v2122_v46 = vpop.f32.mrf.mxu0  ;;  %v2057_v63 = vadd.f32 %v2056_v20, %v2008_v54  ;;  %v2104_v57 = vadd.f32 %v2103_v0, %v2055_v36  ;;  %v2045_v20 = vadd.f32 %v3742_v52, %v1996_v53 }
 0x244   :  { %v2123_v50 = vadd.f32 %v2122_v46, %v3756_v27  ;;  %v2171_v14 = vpop.f32.mrf.mxu1 }
 0x245   :  { %v2332_v61 = vmul.f32 0.2, %v2104_v57 }
 0x246   :  { %v2172_v5 = vadd.f32 %v2171_v14, %v2123_v50  ;;  %v2326_v50 = vmul.f32 0.2, %v2096_v40  ;;  %v2360_v14 = vmax.f32 %v2099_v43, %v2328_v3  ;;  %v2314_v43 = vmul.f32 0.2, %v3712_v62 }
 0x247   :  { %v2364_v44 = vmax.f32 %v2104_v57, %v2332_v61 }
 0x24a   :  { %v2105_v35 = vpop.f32.mrf.mxu3  ;;  %v2215_v15 = vpop.f32.mrf.mxu2 }
 0x24b   :  { %v2106_v12 = vadd.f32 %v2105_v35, %v2057_v63  ;;  %v2216_v48 = vadd.f32 %v2215_v15, %v2167_v28  ;;  %v2124_v6 = vpop.f32.mrf.mxu0  ;;  %v2358_v63 = vmax.f32 %v2096_v40, %v2326_v50  ;;  %v2322_v35 = vmul.f32 0.2, %v3740_v45 }
 0x24c   :  { %v2125_v23 = vadd.f32 %v2124_v6, %v3756_v27  ;;  %v2173_v39 = vpop.f32.mrf.mxu1  ;;  %v2320_v6 = vmul.f32 0.2, %v3733_v25  ;;  %v2310_v40 = vmul.f32 0.2, %v3703_v59  ;;  %v2308_v50 = vmul.f32 0.2, %v3697_v42 }
 0x24d   :  { %v2334_v31 = vmul.f32 0.2, %v2106_v12  ;;  %v2354_v24 = vmax.f32 %v3740_v45, %v2322_v35 }
 0x24e   :  { %v2174_v34 = vadd.f32 %v2173_v39, %v2125_v23  ;;  %v2318_v39 = vmul.f32 0.2, %v3726_v37  ;;  %v2352_v33 = vmax.f32 %v3733_v25, %v2320_v6  ;;  %v2348_v25 = vmax.f32 %v3716_v13, %v2316_v51 }
 0x24f   :  { %v2366_v30 = vmax.f32 %v2106_v12, %v2334_v31 }
 0x250   :  { %v2350_v45 = vmax.f32 %v3726_v37, %v2318_v39  ;;  %v2346_v37 = vmax.f32 %v3712_v62, %v2314_v43  ;;  %v2342_v62 = vmax.f32 %v3703_v59, %v2310_v40 }
 0x251   :  { %2376 = vmatpush.xpose.msra.mxu0 %v2366_v30 }
 0x252   :  { %v2264_v28 = vpop.f32.mrf.mxu3  ;;  %v2217_v56 = vpop.f32.mrf.mxu2 }
 0x253   :  { %v3774_v21 = vadd.f32 %v2264_v28, %v2216_v48  ;;  %v2218_v0 = vadd.f32 %v2217_v56, %v2169_v10  ;;  %v2127_v32 = vpop.f32.mrf.mxu0  ;;  %v2094_v10 = vadd.f32 %v3745_v41, %v2045_v20 }
 0x254   :  { %v2128_v47 = vadd.f32 %v2127_v32, %v3756_v27  ;;  %v2176_v38 = vpop.f32.mrf.mxu1 }
 0x255   :  { %2377 = vmatpush.xpose.msra.mxu0 %v2364_v44  ;;  %v2324_v36 = vmul.f32 0.2, %v2094_v10 }
 0x256   :  { %v2177_v17 = vadd.f32 %v2176_v38, %v2128_v47  ;;  %v2312_v47 = vmul.f32 0.2, %v3707_v60 }
 0x257   :  { %v2356_v2 = vmax.f32 %v2094_v10, %v2324_v36  ;;  %v2304_v36 = vmul.f32 0.2, %v3687_v1 }
 0x258   :  { %v2344_v13 = vmax.f32 %v3707_v60, %v2312_v47  ;;  %v2340_v60 = vmax.f32 %v3697_v42, %v2308_v50 }
 0x259   :  { %2378 = vmatpush.xpose.msra.mxu0 %v2362_v9  ;;  %v2336_v59 = vmax.f32 %v3687_v1, %v2304_v36 }
 0x25a   :  { %v2266_v46 = vpop.f32.mrf.mxu3  ;;  %v2220_v29 = vpop.f32.mrf.mxu2 }
 0x25b   :  { %v3782_v19 = vadd.f32 %v2266_v46, %v2218_v0  ;;  %v2221_v8 = vadd.f32 %v2220_v29, %v2172_v5  ;;  %v2129_v54 = vpop.f32.mrf.mxu0 }
 0x25c   :  { %v2130_v58 = vadd.f32 %v2129_v54, %v3756_v27  ;;  %v2178_v49 = vpop.f32.mrf.mxu1 }
 0x25d   :  { %2379 = vmatpush.xpose.msra.mxu0 %v2360_v14 }
 0x25e   :  { %v2179_v18 = vadd.f32 %v2178_v49, %v2130_v58 }
 0x261   :  { %2380 = vmatpush.xpose.msra.mxu0 %v2358_v63 }
 0x262   :  { %v2269_v52 = vpop.f32.mrf.mxu3  ;;  %v2222_v57 = vpop.f32.mrf.mxu2 }
 0x263   :  { %v3786_v41 = vadd.f32 %v2269_v52, %v2221_v8  ;;  %v2223_v12 = vadd.f32 %v2222_v57, %v2174_v34  ;;  %v2132_v15 = vpop.f32.mrf.mxu0  ;;  %v2306_v8 = vmul.f32 0.2, %v3693_v7 }
 0x264   :  { %v2133_v5 = vadd.f32 %v2132_v15, %v3756_v27  ;;  %v2181_v48 = vpop.f32.mrf.mxu1 }
 0x265   :  { %2381 = vmatpush.xpose.msra.mxu0 %v2356_v2  ;;  %v2338_v63 = vmax.f32 %v3693_v7, %v2306_v8 }
 0x266   :  { %v2182_v31 = vadd.f32 %v2181_v48, %v2133_v5 }
 0x269   :  { %2382 = vmatpush.xpose.msra.mxu0 %v2354_v24 }
 0x26a   :  { %v2271_v23 = vpop.f32.mrf.mxu3  ;;  %v2225_v55 = vpop.f32.mrf.mxu2 }
 0x26b   :  { %v3793_v26 = vadd.f32 %v2271_v23, %v2223_v12  ;;  %v2226_v61 = vadd.f32 %v2225_v55, %v2177_v17  ;;  %v2134_v30 = vpop.f32.mrf.mxu0 }
 0x26c   :  { %v2135_v34 = vadd.f32 %v2134_v30, %v3756_v27  ;;  %v2183_v4 = vpop.f32.mrf.mxu1 }
 0x26d   :  { %2383 = vmatpush.xpose.msra.mxu0 %v2352_v33 }
 0x26e   :  { %v2184_v16 = vadd.f32 %v2183_v4, %v2135_v34 }
 0x271   :  { %2384 = vmatpush.xpose.msra.mxu0 %v2350_v45 }
 0x272   :  { %v2274_v28 = vpop.f32.mrf.mxu3  ;;  %v2227_v44 = vpop.f32.mrf.mxu2 }
 0x273   :  { %v3800_v22 = vadd.f32 %v2274_v28, %v2226_v61  ;;  %v2228_v56 = vadd.f32 %v2227_v44, %v2179_v18  ;;  %v2137_v0 = vpop.f32.mrf.mxu0 }
 0x274   :  { %v2138_v32 = vadd.f32 %v2137_v0, %v3756_v27  ;;  %v2186_v11 = vpop.f32.mrf.mxu1 }
 0x275   :  { %2385 = vmatpush.xpose.msra.mxu0 %v2348_v25 }
 0x276   :  { %v2187_v38 = vadd.f32 %v2186_v11, %v2138_v32 }
 0x279   :  { %2386 = vmatpush.xpose.msra.mxu0 %v2346_v37 }
 0x27a   :  { %v2276_v53 = vpop.f32.mrf.mxu3  ;;  %v2230_v9 = vpop.f32.mrf.mxu2 }
 0x27b   :  { %v3807_v3 = vadd.f32 %v2276_v53, %v2228_v56  ;;  %v2231_v17 = vadd.f32 %v2230_v9, %v2182_v31  ;;  %v2139_v20 = vpop.f32.mrf.mxu0 }
 0x27c   :  { %v2140_v46 = vadd.f32 %v2139_v20, %v3756_v27  ;;  %v2188_v10 = vpop.f32.mrf.mxu1 }
 0x27d   :  { %2387 = vmatpush.xpose.msra.mxu0 %v2344_v13 }
 0x27e   :  { %v2189_v14 = vadd.f32 %v2188_v10, %v2140_v46 }
 0x281   :  { %2388 = vmatpush.xpose.msra.mxu0 %v2342_v62 }
 0x282   :  { %v2279_v29 = vpop.f32.mrf.mxu3  ;;  %v2232_v58 = vpop.f32.mrf.mxu2 }
 0x283   :  { %v3814_v54 = vadd.f32 %v2279_v29, %v2231_v17  ;;  %v2233_v49 = vadd.f32 %v2232_v58, %v2184_v16  ;;  %v2142_v57 = vpop.f32.mrf.mxu0 }
 0x284   :  { %v2191_v5 = vpop.f32.mrf.mxu1  ;;  %v2143_v36 = vadd.f32 %v2142_v57, %v3756_v27 }
 0x285   :  { %2389 = vmatpush.xpose.msra.mxu0 %v2340_v60 }
 0x289   :  { %2390 = vmatpush.xpose.msra.mxu0 %v2338_v63 }
 0x28a   :  { %v2281_v18 = vpop.f32.mrf.mxu3  ;;  %v2235_v35 = vpop.f32.mrf.mxu2 }
 0x28b   :  { %v3819_v52 = vadd.f32 %v2281_v18, %v2233_v49  ;;  %v2236_v2 = vadd.f32 %v2235_v35, %v2187_v38  ;;  %v2144_v6 = vpop.f32.mrf.mxu0 }
 0x28c   :  { %v2193_v23 = vpop.f32.mrf.mxu1 }
 0x28d   :  { %2391 = vmatpush.xpose.msra.mxu0 %v2336_v59 }
 0x292   :  { %v2284_v42 = vpop.f32.mrf.mxu3  ;;  %v2237_v15 = vpop.f32.mrf.mxu2 }
 0x293   :  { %v3821_v12 = vadd.f32 %v2284_v42, %v2236_v2  ;;  %v2238_v48 = vadd.f32 %v2237_v15, %v2189_v14  ;;  %v2147_v39 = vpop.f32.mrf.mxu0  ;;  %v2145_v14 = vadd.f32 %v2144_v6, %v3756_v27  ;;  %v2192_v42 = vadd.f32 %v2191_v5, %v2143_v36 }
 0x294   :  { %v2196_v55 = vpop.f32.mrf.mxu1  ;;  %v2148_v17 = vadd.f32 %v2147_v39, %v3756_v27 }
 0x295   :  { %v2194_v63 = vadd.f32 %v2193_v23, %v2145_v14  ;;  %v2321_v23 = vmul.f32 0.2, %v3821_v12 }
 0x296   :  { %v2197_v29 = vadd.f32 %v2196_v55, %v2148_v17 }
 0x29a   :  { %v2286_v24 = vpop.f32.mrf.mxu3  ;;  %v2240_v7 = vpop.f32.mrf.mxu2 }
 0x29b   :  { %v3823_v31 = vadd.f32 %v2286_v24, %v2238_v48  ;;  %v2149_v34 = vpop.f32.mrf.mxu0  ;;  %v2241_v39 = vadd.f32 %v2240_v7, %v2192_v42  ;;  %v2353_v7 = vmax.f32 %v3821_v12, %v2321_v23 }
 0x29c   :  { %v2198_v4 = vpop.f32.mrf.mxu1  ;;  %v2150_v37 = vadd.f32 %v2149_v34, %v3756_v27 }
 0x29e   :  { %v2199_v20 = vadd.f32 %v2198_v4, %v2150_v37 }
 0x2a2   :  { %v2289_v1 = vpop.f32.mrf.mxu3  ;;  %v2242_v33 = vpop.f32.mrf.mxu2 }
 0x2a3   :  { %v2152_v16 = vpop.f32.mrf.mxu0  ;;  %v2243_v2 = vadd.f32 %v2242_v33, %v2194_v63  ;;  %v2290_v6 = vadd.f32 %v2289_v1, %v2241_v39  ;;  %v2319_v33 = vmul.f32 0.2, %v3819_v52  ;;  %v2368_v1 = vld [vmem:[%s3865_s5] sm:$0x3] }
 0x2a4   :  { %v2201_v43 = vpop.f32.mrf.mxu1  ;;  %v2153_v0 = vadd.f32 %v2152_v16, %v3756_v27  ;;  %v2315_v16 = vmul.f32 0.2, %v3807_v3 }
 0x2a6   :  { %v2202_v38 = vadd.f32 %v2201_v43, %v2153_v0  ;;  %v2347_v12 = vmax.f32 %v3807_v3, %v2315_v16  ;;  %v2311_v43 = vmul.f32 0.2, %v3793_v26  ;;  %v2305_v0 = vmul.f32 0.2, %v3774_v21 }
 0x2aa   :  { %v2291_v61 = vpop.f32.mrf.mxu3  ;;  %v2245_v30 = vpop.f32.mrf.mxu2 }
 0x2ab   :  { %v2154_v44 = vpop.f32.mrf.mxu0  ;;  %v2246_v49 = vadd.f32 %v2245_v30, %v2197_v29  ;;  %v2292_v15 = vadd.f32 %v2291_v61, %v2243_v2  ;;  %v2325_v30 = vmul.f32 0.2, %v2290_v6  ;;  %v2372_v61 = vperm.slane %v2368_v1, 0 }
 0x2ac   :  { %v2155_v32 = vadd.f32 %v2154_v44, %v3756_v27  ;;  %v2203_v11 = vpop.f32.mrf.mxu1  ;;  %v2323_v27 = vmul.f32 0.2, %v3823_v31  ;;  %v2309_v44 = vmul.f32 0.2, %v3786_v41 }
 0x2ad   :  { %v2327_v55 = vmul.f32 0.2, %v2292_v15  ;;  %v2357_v57 = vmax.f32 %v2290_v6, %v2325_v30  ;;  %2392 = vmatmul.f32.vlgmr.msra.gmra.mxu0 %v2372_v61 }
 0x2ae   :  { %v2204_v53 = vadd.f32 %v2203_v11, %v2155_v32  ;;  %v2355_v5 = vmax.f32 %v3823_v31, %v2323_v27  ;;  %v2337_v32 = vmax.f32 %v3774_v21, %v2305_v0  ;;  %v2373_v11 = vperm.slane %v2368_v1, 1 }
 0x2af   :  { %v2359_v4 = vmax.f32 %v2292_v15, %v2327_v55 }
 0x2b2   :  { %v2294_v51 = vpop.f32.mrf.mxu3  ;;  %v2247_v45 = vpop.f32.mrf.mxu2 }
 0x2b3   :  { %v2248_v50 = vadd.f32 %v2247_v45, %v2199_v20  ;;  %v2295_v18 = vadd.f32 %v2294_v51, %v2246_v49  ;;  %v2317_v51 = vmul.f32 0.2, %v3814_v54  ;;  %v2351_v45 = vmax.f32 %v3819_v52, %v2319_v33 }
 0x2b4   :  { %v2343_v52 = vmax.f32 %v3793_v26, %v2311_v43  ;;  %v2370_v26 = vstv %s3866_s6 }
 0x2b5   :  { %v2329_v48 = vmul.f32 0.2, %v2295_v18  ;;  %v2349_v31 = vmax.f32 %v3814_v54, %v2317_v51  ;;  %v2341_v54 = vmax.f32 %v3786_v41, %v2309_v44 }
 0x2b7   :  { %v2361_v34 = vmax.f32 %v2295_v18, %v2329_v48 }
 0x2ba   :  { %v2296_v28 = vpop.f32.mrf.mxu3  ;;  %v2250_v25 = vpop.f32.mrf.mxu2 }
 0x2bb   :  { %v2251_v40 = vadd.f32 %v2250_v25, %v2202_v38  ;;  %v2297_v8 = vadd.f32 %v2296_v28, %v2248_v50  ;;  %v2313_v28 = vmul.f32 0.2, %v3800_v22 }
 0x2bd   :  { %v2331_v59 = vmul.f32 0.2, %v2297_v8  ;;  %v2345_v25 = vmax.f32 %v3800_v22, %v2313_v28 }
 0x2bf   :  { %v2363_v24 = vmax.f32 %v2297_v8, %v2331_v59 }
 0x2c2   :  { %v2299_v56 = vpop.f32.mrf.mxu3  ;;  %v2252_v47 = vpop.f32.mrf.mxu2 }
 0x2c3   :  { %v2253_v13 = vadd.f32 %v2252_v47, %v2204_v53  ;;  %v2300_v46 = vadd.f32 %v2299_v56, %v2251_v40  ;;  %v2307_v56 = vmul.f32 0.2, %v3782_v19 }
 0x2c5   :  { %v2333_v60 = vmul.f32 0.2, %v2300_v46  ;;  %v2339_v3 = vmax.f32 %v3782_v19, %v2307_v56 }
 0x2c7   :  { %v2365_v35 = vmax.f32 %v2300_v46, %v2333_v60 }
 0x2ca   :  { %v2301_v9 = vpop.f32.mrf.mxu3 }
 0x2cb   :  { %v2302_v10 = vadd.f32 %v2301_v9, %v2253_v13 }
 0x2cd   :  { %v2335_v62 = vmul.f32 0.2, %v2302_v10 }
 0x2cf   :  { %v2367_v58 = vmax.f32 %v2302_v10, %v2335_v62 }
 0x2d1   :  { %2396 = vmatpush.xpose.msra.mxu1 %v2367_v58 }
 0x2d5   :  { %2397 = vmatpush.xpose.msra.mxu1 %v2365_v35 }
 0x2d9   :  { %2398 = vmatpush.xpose.msra.mxu1 %v2363_v24 }
 0x2dd   :  { %2399 = vmatpush.xpose.msra.mxu1 %v2361_v34 }
 0x2e1   :  { %2400 = vmatpush.xpose.msra.mxu1 %v2359_v4 }
 0x2e5   :  { %2401 = vmatpush.xpose.msra.mxu1 %v2357_v57 }
 0x2e9   :  { %2402 = vmatpush.xpose.msra.mxu1 %v2355_v5 }
 0x2ed   :  { %2403 = vmatpush.xpose.msra.mxu1 %v2353_v7 }
 0x2f1   :  { %2404 = vmatpush.xpose.msra.mxu1 %v2351_v45 }
 0x2f5   :  { %2405 = vmatpush.xpose.msra.mxu1 %v2349_v31 }
 0x2f9   :  { %2406 = vmatpush.xpose.msra.mxu1 %v2347_v12 }
 0x2fd   :  { %2407 = vmatpush.xpose.msra.mxu1 %v2345_v25 }
 0x301   :  { %2408 = vmatpush.xpose.msra.mxu1 %v2343_v52 }
 0x305   :  { %2409 = vmatpush.xpose.msra.mxu1 %v2341_v54 }
 0x309   :  { %2410 = vmatpush.xpose.msra.mxu1 %v2339_v3 }
 0x30d   :  { %2411 = vmatpush.xpose.msra.mxu1 %v2337_v32 }
 0x310   :  { %2412 = vmatmul.f32.vlgmr.msra.gmra.mxu1 %v2373_v11 }
 0x32a   :  { %v2393_v22 = vpop.f32.mrf.mxu0 }
 0x32b   :  { %v2394_v47 = vadd.f32 %v2393_v22, %v2370_v26 }
 0x38d   :  { %v2413_v37 = vpop.f32.mrf.mxu1 }
 0x38e   :  { %v2414_v38 = vadd.f32 %v2413_v37, %v2394_v47 }
 0x390   :  { %v2416_v41 = vsub.f32 0.0, %v2414_v38 }
 0x392   :  { %v2417_v53 = vmul.f32 1.442695, %v2416_v41 }
 0x394   :  { %3170 = vpow2.f32 %v2417_v53 }
 0x39a   :  { %v3171_v40 = vpop.eup %3170 }
 0x39b   :  { %v2419_v13 = vadd.f32 1.0, %v3171_v40 }
 0x39d   :  { %3172 = vrcp.f32 %v2419_v13 }
 0x3a3   :  { %v3173_v21 = vpop.eup %3172 }
 0x3a4   :  { %2421 = vst [vmem:[#allocation12] sm:$0x1] %v3173_v21 }
 0x3a5   :  { %2432 = dma.vmem_to_hbm [thread:$0]  %s2428_s26, 16, %s2430_s29, [#allocation6]  }
 0x3a6   :  { %3300 = dma.done.wait [#allocation6], 16  }
 0x3a7   :  { %3301 = vsyncadd [#allocation6], 4294967280 }
 0x3a8   :  { %2437 = vsyncpa [#allocation5], 1 }
 0x3a9   :  { %2438 = vsyncpa [#allocation8], 1 }
 0x3aa   :  { %2439 = vsyncpa [#allocation11], 1 }
 0x3ab   :  { %2440 = vsyncpa [#allocation6], 1 }

</bundles_post_ra>
